<compile_context>
chip_gen: v7x
topology: tpu7x:2x2x1
jax: 0.10.0
libtpu: 0.0.40
codegen_flags: <defaults>
</compile_context>

<pallas_src>
import functools

import jax
import jax.numpy as jnp
from jax.experimental import pallas as pl
from jax.experimental.pallas import tpu as pltpu

# ----------------------------- model sizes (small, synthetic) -----------------------------
BATCH = 2
OBS_DIM = 16
HIDDEN = 32            # LSTM hidden size
PI_DIM = 32            # mlp_extractor pi layers [32, 32]
ACT_DIM = 4            # continuous action dimension

LANES = 128            # vreg lane width; also 4*HIDDEN
ZH_DIM = OBS_DIM + HIDDEN          # packed gate-weight rows: [W_ih ; W_hh] = 48
MLP_ROWS = HIDDEN + 2 * PI_DIM     # packed MLP-weight rows: [W1 ; W2 ; Wa] = 96
MAX_T_CHUNK = 128      # per-chunk obs/action/stash slabs stay << VMEM even on v7x (64 MiB)

assert 4 * HIDDEN == LANES
assert PI_DIM <= LANES and ACT_DIM <= LANES


# ----------------------------------- Pallas kernel ----------------------------------------
def _recurrent_policy_kernel(obs_ref, mask_ref, h0_ref, c0_ref, wg_ref, wm_ref, b_ref,
                             act_ref, h_out_ref, c_out_ref, g_stash, h_stash,
                             *, t_total, t_chunk):
    H = HIDDEN
    chunk = pl.program_id(0)
    n_steps, bp = obs_ref.shape[0], obs_ref.shape[1]
    m = n_steps * bp

    # Cross-chunk (h, c) carry lives in the resident output blocks (constant index_map).
    @pl.when(chunk == 0)
    def _init():
        h_out_ref[...] = h0_ref[...]
        c_out_ref[...] = c0_ref[...]

    # ---- pass 1: batched input projection for all timesteps of the chunk (off critical path) --
    obs_flat = obs_ref[...].reshape(m, OBS_DIM)                       # (m, 16) f32, free reshape
    g_stash[...] = (jnp.dot(obs_flat, wg_ref[0:OBS_DIM, :],
                            preferred_element_type=jnp.float32)
                    + b_ref[0:1, :]).reshape(n_steps, bp, 4 * H)      # obs @ W_ih + b_lstm

    # ---- pass 2: serial LSTM recurrence; (h, c) carried as vreg values, 1 matmul + 1 tanh/step --
    w_hh = wg_ref[OBS_DIM:ZH_DIM, :]                                  # (H, 4H) f32, hoisted

    def step(s, carry):
        h, c = carry
        keep = 1.0 - mask_ref[s]                                      # (Bp, 1) episode-start reset
        gates = g_stash[s] + jnp.dot(keep * h, w_hh,
                                     preferred_element_type=jnp.float32)  # (Bp, 4H) f32
        t = jnp.tanh(gates)                        # single EUP pass over the full 128-lane vreg
        sg = 0.5 * t + 0.5                         # == sigmoid for the pre-halved i/f/o columns
        c_new = sg[:, H:2 * H] * (keep * c) + sg[:, 0:H] * t[:, 2 * H:3 * H]
        h_new = sg[:, 3 * H:4 * H] * jnp.tanh(c_new)
        h_stash[s] = h_new                                            # stash for the batched head
        if t_total % t_chunk != 0:                 # static: only emitted when T was padded
            valid = (chunk * t_chunk + s) < t_total
            h_new = jnp.where(valid, h_new, h)
            c_new = jnp.where(valid, c_new, c)
        return h_new, c_new

    h_fin, c_fin = jax.lax.fori_loop(0, n_steps, step,
                                     (h_out_ref[...], c_out_ref[...]),
                                     unroll=min(8, n_steps))
    h_out_ref[...] = h_fin
    c_out_ref[...] = c_fin

    # ---- pass 3: mlp_extractor pi net + action head, batched over all timesteps of the chunk ----
    x = h_stash[...].reshape(m, H).astype(jnp.bfloat16)
    x = jnp.tanh(jnp.dot(x, wm_ref[0:H, :], preferred_element_type=jnp.float32)
                 + b_ref[1:2, :])
    x = jnp.tanh(jnp.dot(x[:, :PI_DIM].astype(jnp.bfloat16), wm_ref[H:H + PI_DIM, :],
                         preferred_element_type=jnp.float32) + b_ref[2:3, :])
    act = (jnp.dot(x[:, :PI_DIM].astype(jnp.bfloat16),
                   wm_ref[H + PI_DIM:H + 2 * PI_DIM, :],
                   preferred_element_type=jnp.float32) + b_ref[3:4, :])
    # TODO(synk): the reference policy.forward samples the action distribution
    #             (deterministic=False) and also produces values/log-probs; this is the mean only.
    act_ref[...] = act.reshape(n_steps, bp, LANES).astype(act_ref.dtype)


# ----------------------------------- wrappers ----------------------------------------------
@jax.jit
def recurrent_policy_rollout(obs_seq, lstm_state, mask_seq, w_gate, w_mlp, b_packed):
    """Run T fused policy steps.

    obs_seq:    (T, B, OBS_DIM) f32
    lstm_state: (2, B, HIDDEN)  f32   -- [h; c], same layout as the PyTorch wrapper input
    mask_seq:   (T, B)          f32   -- episode_start flags
    Returns (actions (T, B, ACT_DIM), new_lstm_state (2, B, HIDDEN)).
    T == 1 reproduces a single RecurrentPolicyWrapper.forward call.
    """
    T, B, _ = obs_seq.shape
    Bp = max(8, ((B + 7) // 8) * 8)
    t_chunk = min(T, MAX_T_CHUNK)
    num_chunks = pl.cdiv(T, t_chunk)
    T_pad = num_chunks * t_chunk

    # Host-side layout plumbing (tiny, fused by XLA): pad batch to the sublane multiple and pad
    # T to a multiple of the chunk (out-of-range steps are masked inside the kernel).
    obs_p = jnp.zeros((T_pad, Bp, OBS_DIM), jnp.float32).at[:T, :B, :].set(
        obs_seq.astype(jnp.float32))
    mask_p = jnp.zeros((T_pad, Bp, 1), jnp.float32).at[:T, :B, 0].set(
        mask_seq.astype(jnp.float32))
    h0 = jnp.zeros((Bp, HIDDEN), jnp.float32).at[:B].set(lstm_state[0].astype(jnp.float32))
    c0 = jnp.zeros((Bp, HIDDEN), jnp.float32).at[:B].set(lstm_state[1].astype(jnp.float32))

    kernel = functools.partial(_recurrent_policy_kernel, t_total=T, t_chunk=t_chunk)

    act_p, h_t, c_t = pl.pallas_call(
        kernel,
        grid=(num_chunks,),
        in_specs=[
            pl.BlockSpec((t_chunk, Bp, OBS_DIM), lambda c: (c, 0, 0)),   # obs chunk
            pl.BlockSpec((t_chunk, Bp, 1), lambda c: (c, 0, 0)),         # episode_start chunk
            pl.BlockSpec((Bp, HIDDEN), lambda c: (0, 0)),                # h0 (fetched once)
            pl.BlockSpec((Bp, HIDDEN), lambda c: (0, 0)),                # c0 (fetched once)
            pl.BlockSpec((ZH_DIM, LANES), lambda c: (0, 0)),             # f32 gate weights [W_ih;W_hh]
            pl.BlockSpec((MLP_ROWS, LANES), lambda c: (0, 0)),           # bf16 MLP weights [W1;W2;Wa]
            pl.BlockSpec((8, LANES), lambda c: (0, 0)),                  # f32 packed biases
        ],
        out_specs=(
            pl.BlockSpec((t_chunk, Bp, LANES), lambda c: (c, 0, 0)),     # lane-dense actions
            pl.BlockSpec((Bp, HIDDEN), lambda c: (0, 0)),                # h_T (resident carry)
            pl.BlockSpec((Bp, HIDDEN), lambda c: (0, 0)),                # c_T (resident carry)
        ),
        out_shape=(
            jax.ShapeDtypeStruct((T_pad, Bp, LANES), jnp.float32),
            jax.ShapeDtypeStruct((Bp, HIDDEN), jnp.float32),
            jax.ShapeDtypeStruct((Bp, HIDDEN), jnp.float32),
        ),
        scratch_shapes=[
            pltpu.VMEM((t_chunk, Bp, 4 * HIDDEN), jnp.float32),   # precomputed obs gate projections
            pltpu.VMEM((t_chunk, Bp, HIDDEN), jnp.float32),       # per-step h stash for the MLP head
        ],
        input_output_aliases={2: 1, 3: 2},            # write h_T / c_T back over h0 / c0 buffers
        compiler_params=pltpu.CompilerParams(dimension_semantics=("arbitrary",)),
    )(obs_p, mask_p, h0, c0, w_gate, w_mlp, b_packed)

    actions = act_p[:T, :B, :ACT_DIM]
    new_state = jnp.stack([h_t[:B], c_t[:B]], axis=0)
    return actions, new_state


def recurrent_policy_forward(obs, lstm_state, mask, w_gate, w_mlp, b_packed):
    """Single-step interface matching RecurrentPolicyWrapper.forward (plus the new state).

    Note: at T=1 the call is pure launch + weight-DMA latency; amortize by batching environments
    per call or rolling out multiple steps through recurrent_policy_rollout.
    """
    actions, new_state = recurrent_policy_rollout(obs[None], lstm_state, mask[None],
                                                  w_gate, w_mlp, b_packed)
    return actions[0], new_state


# --------------------------- parameters (synthetic, pre-transposed) ------------------------
def init_params(key):
    ks = jax.random.split(key, 9)
    s = 0.1
    # Weight matrices stored in (in, out) layout (i.e. PyTorch weight.T); biases 1-D.
    return {
        "w_ih": s * jax.random.normal(ks[0], (OBS_DIM, 4 * HIDDEN), jnp.float32),
        "w_hh": s * jax.random.normal(ks[1], (HIDDEN, 4 * HIDDEN), jnp.float32),
        "b_lstm": s * jax.random.normal(ks[2], (4 * HIDDEN,), jnp.float32),  # b_ih + b_hh folded
        "w1": s * jax.random.normal(ks[3], (HIDDEN, PI_DIM), jnp.float32),
        "b1": s * jax.random.normal(ks[4], (PI_DIM,), jnp.float32),
        "w2": s * jax.random.normal(ks[5], (PI_DIM, PI_DIM), jnp.float32),
        "b2": s * jax.random.normal(ks[6], (PI_DIM,), jnp.float32),
        "wa": s * jax.random.normal(ks[7], (PI_DIM, ACT_DIM), jnp.float32),
        "ba": s * jax.random.normal(ks[8], (ACT_DIM,), jnp.float32),
    }


def pack_params(params):
    """Pack weights into 3 resident slabs: f32 gate, bf16 MLP, f32 biases.

    Single-tanh gate trick: sigmoid(z) = 0.5*tanh(z/2) + 0.5, so the i/f/o gate columns of
    W_ih, W_hh and b_lstm are pre-scaled by 0.5 (the g-gate columns are left untouched).
    """
    H = HIDDEN
    col_scale = jnp.concatenate([jnp.full((H,), 0.5), jnp.full((H,), 0.5),
                                 jnp.ones((H,)), jnp.full((H,), 0.5)]).astype(jnp.float32)
    w_ih = params["w_ih"] * col_scale
    w_hh = params["w_hh"] * col_scale
    b_lstm = params["b_lstm"] * col_scale
    w_gate = jnp.concatenate([w_ih, w_hh], axis=0).astype(jnp.float32)       # (48, 128) f32

    # MLP slab with W2/Wa contraction shrunk to PI_DIM=32 rows (zero-padded only on lanes).
    w1 = jnp.zeros((HIDDEN, LANES), jnp.float32).at[:, :PI_DIM].set(params["w1"])
    w2 = jnp.zeros((PI_DIM, LANES), jnp.float32).at[:, :PI_DIM].set(params["w2"])
    wa = jnp.zeros((PI_DIM, LANES), jnp.float32).at[:, :ACT_DIM].set(params["wa"])
    w_mlp = jnp.concatenate([w1, w2, wa], axis=0).astype(jnp.bfloat16)       # (96, 128) bf16

    b = jnp.zeros((8, LANES), jnp.float32)
    b = b.at[0, :4 * HIDDEN].set(b_lstm)
    b = b.at[1, :PI_DIM].set(params["b1"])
    b = b.at[2, :PI_DIM].set(params["b2"])
    b = b.at[3, :ACT_DIM].set(params["ba"])
    return w_gate, w_mlp, b


# --------------------------------- pure-JAX reference ---------------------------------------
def reference_rollout(obs_seq, lstm_state, mask_seq, params):
    h, c = lstm_state[0], lstm_state[1]
    acts = []
    for t in range(obs_seq.shape[0]):
        keep = (1.0 - mask_seq[t])[:, None]
        h, c = keep * h, keep * c
        gates = obs_seq[t] @ params["w_ih"] + h @ params["w_hh"] + params["b_lstm"]
        i_g = jax.nn.sigmoid(gates[:, 0 * HIDDEN:1 * HIDDEN])
        f_g = jax.nn.sigmoid(gates[:, 1 * HIDDEN:2 * HIDDEN])
        g_g = jnp.tanh(gates[:, 2 * HIDDEN:3 * HIDDEN])
        o_g = jax.nn.sigmoid(gates[:, 3 * HIDDEN:4 * HIDDEN])
        c = f_g * c + i_g * g_g
        h = o_g * jnp.tanh(c)
        x = jnp.tanh(h @ params["w1"] + params["b1"])
        x = jnp.tanh(x @ params["w2"] + params["b2"])
        acts.append(x @ params["wa"] + params["ba"])
    return jnp.stack(acts, axis=0), jnp.stack([h, c], axis=0)


# --------------------------------------- main -----------------------------------------------
if __name__ == "__main__":
    key = jax.random.PRNGKey(0)
    k_obs, k_state, k_mask, k_param = jax.random.split(key, 4)

    T = 8
    obs_seq = jax.random.normal(k_obs, (T, BATCH, OBS_DIM), jnp.float32)
    lstm_state = jax.random.normal(k_state, (2, BATCH, HIDDEN), jnp.float32)
    mask_seq = (jax.random.uniform(k_mask, (T, BATCH)) < 0.2).astype(jnp.float32)

    params = init_params(k_param)
    w_gate, w_mlp, b_packed = pack_params(params)

    # Fused multi-step rollout through the kernel.
    actions, new_state = recurrent_policy_rollout(obs_seq, lstm_state, mask_seq,
                                                  w_gate, w_mlp, b_packed)
    jax.block_until_ready(actions)

    # Single-step call (original module interface).
    act1, _ = recurrent_policy_forward(obs_seq[0], lstm_state, mask_seq[0],
                                       w_gate, w_mlp, b_packed)
    jax.block_until_ready(act1)

    # Validate against the f32 pure-JAX reference (recurrence is f32; only the MLP head is bf16).
    ref_actions, ref_state = reference_rollout(obs_seq, lstm_state, mask_seq, params)

    assert actions.shape == (T, BATCH, ACT_DIM) and actions.dtype == jnp.float32
    assert new_state.shape == (2, BATCH, HIDDEN)
    assert act1.shape == (BATCH, ACT_DIM)
    assert jnp.allclose(actions, ref_actions, atol=2e-2, rtol=2e-2)
    assert jnp.allclose(new_state, ref_state, atol=2e-2, rtol=2e-2)
    assert jnp.allclose(act1, ref_actions[0], atol=2e-2, rtol=2e-2)
    print("KERNEL_OK")
</pallas_src>

<mosaic_0001>
module attributes {stable_mosaic.version = 11 : i64} {
  func.func @_recurrent_policy_kernel(%arg0: i32, %arg1: memref<8x8x16xf32, #tpu.memory_space<vmem>>, %arg2: memref<8x8x1xf32, #tpu.memory_space<vmem>>, %arg3: memref<8x32xf32, #tpu.memory_space<vmem>>, %arg4: memref<8x32xf32, #tpu.memory_space<vmem>>, %arg5: memref<48x128xf32, #tpu.memory_space<vmem>>, %arg6: memref<96x128xbf16, #tpu.memory_space<vmem>>, %arg7: memref<8x128xf32, #tpu.memory_space<vmem>>, %arg8: memref<8x8x128xf32, #tpu.memory_space<vmem>>, %arg9: memref<8x32xf32, #tpu.memory_space<vmem>>, %arg10: memref<8x32xf32, #tpu.memory_space<vmem>>, %arg11: memref<8x8x128xf32, #tpu.memory_space<vmem>>, %arg12: memref<8x8x32xf32, #tpu.memory_space<vmem>>) attributes {dimension_semantics = [#tpu.dimension_semantics<arbitrary>], iteration_bounds = array<i64: 1>, scalar_prefetch = 0 : i64, scratch_operands = 2 : i64, tpu.core_type = #tpu.core_type<tc>, window_params = [{transform_indices = @transform_0, window_bounds = array<i64: 8, 8, 16>}, {transform_indices = @transform_1, window_bounds = array<i64: 8, 8, 1>}, {pipeline_mode = #tpu.pipeline_mode<synchronous>, transform_indices = @transform_2, window_bounds = array<i64: 8, 32>}, {pipeline_mode = #tpu.pipeline_mode<synchronous>, transform_indices = @transform_3, window_bounds = array<i64: 8, 32>}, {pipeline_mode = #tpu.pipeline_mode<synchronous>, transform_indices = @transform_4, window_bounds = array<i64: 48, 128>}, {pipeline_mode = #tpu.pipeline_mode<synchronous>, transform_indices = @transform_5, window_bounds = array<i64: 96, 128>}, {pipeline_mode = #tpu.pipeline_mode<synchronous>, transform_indices = @transform_6, window_bounds = array<i64: 8, 128>}, {transform_indices = @transform_7, window_bounds = array<i64: 8, 8, 128>}, {pipeline_mode = #tpu.pipeline_mode<synchronous>, transform_indices = @transform_8, window_bounds = array<i64: 8, 32>}, {pipeline_mode = #tpu.pipeline_mode<synchronous>, transform_indices = @transform_9, window_bounds = array<i64: 8, 32>}]} {
    %c0_i32 = arith.constant 0 : i32
    %0 = arith.cmpi eq, %arg0, %c0_i32 : i32
    %1 = arith.extui %0 : i1 to i32
    %c0_i32_0 = arith.constant 0 : i32
    %2 = arith.cmpi ne, %1, %c0_i32_0 : i32
    scf.if %2 {
      %c0_116 = arith.constant 0 : index
      %c0_117 = arith.constant 0 : index
      %299 = vector.load %arg3[%c0_116, %c0_117] : memref<8x32xf32, #tpu.memory_space<vmem>>, vector<8x32xf32>
      %c0_118 = arith.constant 0 : index
      %c0_119 = arith.constant 0 : index
      %300 = vector.load %arg9[%c0_118, %c0_119] : memref<8x32xf32, #tpu.memory_space<vmem>>, vector<8x32xf32>
      tpu.vector_store %arg9[%c0_118, %c0_119], %299 {strides = array<i32>} : memref<8x32xf32, #tpu.memory_space<vmem>>, vector<8x32xf32>,
      %c0_120 = arith.constant 0 : index
      %c0_121 = arith.constant 0 : index
      %301 = vector.load %arg4[%c0_120, %c0_121] : memref<8x32xf32, #tpu.memory_space<vmem>>, vector<8x32xf32>
      %c0_122 = arith.constant 0 : index
      %c0_123 = arith.constant 0 : index
      %302 = vector.load %arg10[%c0_122, %c0_123] : memref<8x32xf32, #tpu.memory_space<vmem>>, vector<8x32xf32>
      tpu.vector_store %arg10[%c0_122, %c0_123], %301 {strides = array<i32>} : memref<8x32xf32, #tpu.memory_space<vmem>>, vector<8x32xf32>,
    } else {
    }
    %c0 = arith.constant 0 : index
    %c0_1 = arith.constant 0 : index
    %c0_2 = arith.constant 0 : index
    %3 = vector.load %arg1[%c0, %c0_1, %c0_2] : memref<8x8x16xf32, #tpu.memory_space<vmem>>, vector<8x8x16xf32>
    %4 = vector.shape_cast %3 : vector<8x8x16xf32> to vector<64x16xf32>
    %c0_3 = arith.constant 0 : index
    %c0_4 = arith.constant 0 : index
    %5 = vector.load %arg5[%c0_3, %c0_4] : memref<48x128xf32, #tpu.memory_space<vmem>>, vector<16x128xf32>
    %cst = arith.constant dense<0.000000e+00> : vector<64x128xf32>
    %6 = tpu.matmul %4, %5, %cst {dimension_numbers = #tpu.dot_dimension_numbers<[1], [0], [0], [1], [0, 0, 1, 1], [], []>} : vector<64x16xf32>, vector<16x128xf32>, vector<64x128xf32> -> vector<64x128xf32>
    %c0_5 = arith.constant 0 : index
    %c0_6 = arith.constant 0 : index
    %7 = vector.load %arg7[%c0_5, %c0_6] : memref<8x128xf32, #tpu.memory_space<vmem>>, vector<1x128xf32>
    %8 = vector.broadcast %7 : vector<1x128xf32> to vector<64x128xf32>
    %9 = arith.addf %6, %8 : vector<64x128xf32>
    %10 = vector.shape_cast %9 : vector<64x128xf32> to vector<8x8x128xf32>
    %c0_7 = arith.constant 0 : index
    %c0_8 = arith.constant 0 : index
    %c0_9 = arith.constant 0 : index
    %11 = vector.load %arg11[%c0_7, %c0_8, %c0_9] : memref<8x8x128xf32, #tpu.memory_space<vmem>>, vector<8x8x128xf32>
    tpu.vector_store %arg11[%c0_7, %c0_8, %c0_9], %10 {strides = array<i32>} : memref<8x8x128xf32, #tpu.memory_space<vmem>>, vector<8x8x128xf32>,
    %c16 = arith.constant 16 : index
    %c0_10 = arith.constant 0 : index
    %12 = vector.load %arg5[%c16, %c0_10] : memref<48x128xf32, #tpu.memory_space<vmem>>, vector<32x128xf32>
    %c0_11 = arith.constant 0 : index
    %c0_12 = arith.constant 0 : index
    %13 = vector.load %arg9[%c0_11, %c0_12] : memref<8x32xf32, #tpu.memory_space<vmem>>, vector<8x32xf32>
    %c0_13 = arith.constant 0 : index
    %c0_14 = arith.constant 0 : index
    %14 = vector.load %arg10[%c0_13, %c0_14] : memref<8x32xf32, #tpu.memory_space<vmem>>, vector<8x32xf32>
    %c0_i32_15 = arith.constant 0 : i32
    %15 = arith.index_cast %c0_i32_15 : i32 to index
    %c0_16 = arith.constant 0 : index
    %c0_17 = arith.constant 0 : index
    %16 = vector.load %arg2[%15, %c0_16, %c0_17] : memref<8x8x1xf32, #tpu.memory_space<vmem>>, vector<1x8x1xf32>
    %17 = vector.shape_cast %16 : vector<1x8x1xf32> to vector<8x1xf32>
    %cst_18 = arith.constant 1.000000e+00 : f32
    %18 = vector.broadcast %cst_18 : f32 to vector<8x1xf32>
    %19 = arith.subf %18, %17 : vector<8x1xf32>
    %20 = arith.index_cast %c0_i32_15 : i32 to index
    %c0_19 = arith.constant 0 : index
    %c0_20 = arith.constant 0 : index
    %21 = vector.load %arg11[%20, %c0_19, %c0_20] : memref<8x8x128xf32, #tpu.memory_space<vmem>>, vector<1x8x128xf32>
    %22 = vector.shape_cast %21 : vector<1x8x128xf32> to vector<8x128xf32>
    %23 = vector.broadcast %19 : vector<8x1xf32> to vector<8x32xf32>
    %24 = arith.mulf %23, %13 : vector<8x32xf32>
    %cst_21 = arith.constant dense<0.000000e+00> : vector<8x128xf32>
    %25 = tpu.matmul %24, %12, %cst_21 {dimension_numbers = #tpu.dot_dimension_numbers<[1], [0], [0], [1], [0, 0, 1, 1], [], []>} : vector<8x32xf32>, vector<32x128xf32>, vector<8x128xf32> -> vector<8x128xf32>
    %26 = arith.addf %22, %25 : vector<8x128xf32>
    %27 = math.tanh %26 : vector<8x128xf32>
    %cst_22 = arith.constant 5.000000e-01 : f32
    %28 = vector.broadcast %cst_22 : f32 to vector<8x128xf32>
    %29 = arith.mulf %28, %27 : vector<8x128xf32>
    %cst_23 = arith.constant 5.000000e-01 : f32
    %30 = vector.broadcast %cst_23 : f32 to vector<8x128xf32>
    %31 = arith.addf %29, %30 : vector<8x128xf32>
    %32 = vector.extract_strided_slice %31 {offsets = [0, 32], sizes = [8, 32], strides = [1, 1]} : vector<8x128xf32> to vector<8x32xf32>
    %33 = vector.broadcast %19 : vector<8x1xf32> to vector<8x32xf32>
    %34 = arith.mulf %33, %14 : vector<8x32xf32>
    %35 = arith.mulf %32, %34 : vector<8x32xf32>
    %36 = vector.extract_strided_slice %31 {offsets = [0, 0], sizes = [8, 32], strides = [1, 1]} : vector<8x128xf32> to vector<8x32xf32>
    %37 = vector.extract_strided_slice %27 {offsets = [0, 64], sizes = [8, 32], strides = [1, 1]} : vector<8x128xf32> to vector<8x32xf32>
    %38 = arith.mulf %36, %37 : vector<8x32xf32>
    %39 = arith.addf %35, %38 : vector<8x32xf32>
    %40 = vector.extract_strided_slice %31 {offsets = [0, 96], sizes = [8, 32], strides = [1, 1]} : vector<8x128xf32> to vector<8x32xf32>
    %41 = math.tanh %39 : vector<8x32xf32>
    %42 = arith.mulf %40, %41 : vector<8x32xf32>
    %43 = arith.index_cast %c0_i32_15 : i32 to index
    %c0_24 = arith.constant 0 : index
    %c0_25 = arith.constant 0 : index
    %44 = vector.load %arg12[%43, %c0_24, %c0_25] : memref<8x8x32xf32, #tpu.memory_space<vmem>>, vector<1x8x32xf32>
    %45 = vector.shape_cast %44 : vector<1x8x32xf32> to vector<8x32xf32>
    %46 = vector.shape_cast %42 : vector<8x32xf32> to vector<1x8x32xf32>
    tpu.vector_store %arg12[%43, %c0_24, %c0_25], %46 {strides = array<i32>} : memref<8x8x32xf32, #tpu.memory_space<vmem>>, vector<1x8x32xf32>,
    %c1_i32 = arith.constant 1 : i32
    %47 = arith.index_cast %c1_i32 : i32 to index
    %c0_26 = arith.constant 0 : index
    %c0_27 = arith.constant 0 : index
    %48 = vector.load %arg2[%47, %c0_26, %c0_27] : memref<8x8x1xf32, #tpu.memory_space<vmem>>, vector<1x8x1xf32>
    %49 = vector.shape_cast %48 : vector<1x8x1xf32> to vector<8x1xf32>
    %cst_28 = arith.constant 1.000000e+00 : f32
    %50 = vector.broadcast %cst_28 : f32 to vector<8x1xf32>
    %51 = arith.subf %50, %49 : vector<8x1xf32>
    %52 = arith.index_cast %c1_i32 : i32 to index
    %c0_29 = arith.constant 0 : index
    %c0_30 = arith.constant 0 : index
    %53 = vector.load %arg11[%52, %c0_29, %c0_30] : memref<8x8x128xf32, #tpu.memory_space<vmem>>, vector<1x8x128xf32>
    %54 = vector.shape_cast %53 : vector<1x8x128xf32> to vector<8x128xf32>
    %55 = vector.broadcast %51 : vector<8x1xf32> to vector<8x32xf32>
    %56 = arith.mulf %55, %42 : vector<8x32xf32>
    %cst_31 = arith.constant dense<0.000000e+00> : vector<8x128xf32>
    %57 = tpu.matmul %56, %12, %cst_31 {dimension_numbers = #tpu.dot_dimension_numbers<[1], [0], [0], [1], [0, 0, 1, 1], [], []>} : vector<8x32xf32>, vector<32x128xf32>, vector<8x128xf32> -> vector<8x128xf32>
    %58 = arith.addf %54, %57 : vector<8x128xf32>
    %59 = math.tanh %58 : vector<8x128xf32>
    %cst_32 = arith.constant 5.000000e-01 : f32
    %60 = vector.broadcast %cst_32 : f32 to vector<8x128xf32>
    %61 = arith.mulf %60, %59 : vector<8x128xf32>
    %cst_33 = arith.constant 5.000000e-01 : f32
    %62 = vector.broadcast %cst_33 : f32 to vector<8x128xf32>
    %63 = arith.addf %61, %62 : vector<8x128xf32>
    %64 = vector.extract_strided_slice %63 {offsets = [0, 32], sizes = [8, 32], strides = [1, 1]} : vector<8x128xf32> to vector<8x32xf32>
    %65 = vector.broadcast %51 : vector<8x1xf32> to vector<8x32xf32>
    %66 = arith.mulf %65, %39 : vector<8x32xf32>
    %67 = arith.mulf %64, %66 : vector<8x32xf32>
    %68 = vector.extract_strided_slice %63 {offsets = [0, 0], sizes = [8, 32], strides = [1, 1]} : vector<8x128xf32> to vector<8x32xf32>
    %69 = vector.extract_strided_slice %59 {offsets = [0, 64], sizes = [8, 32], strides = [1, 1]} : vector<8x128xf32> to vector<8x32xf32>
    %70 = arith.mulf %68, %69 : vector<8x32xf32>
    %71 = arith.addf %67, %70 : vector<8x32xf32>
    %72 = vector.extract_strided_slice %63 {offsets = [0, 96], sizes = [8, 32], strides = [1, 1]} : vector<8x128xf32> to vector<8x32xf32>
    %73 = math.tanh %71 : vector<8x32xf32>
    %74 = arith.mulf %72, %73 : vector<8x32xf32>
    %75 = arith.index_cast %c1_i32 : i32 to index
    %c0_34 = arith.constant 0 : index
    %c0_35 = arith.constant 0 : index
    %76 = vector.load %arg12[%75, %c0_34, %c0_35] : memref<8x8x32xf32, #tpu.memory_space<vmem>>, vector<1x8x32xf32>
    %77 = vector.shape_cast %76 : vector<1x8x32xf32> to vector<8x32xf32>
    %78 = vector.shape_cast %74 : vector<8x32xf32> to vector<1x8x32xf32>
    tpu.vector_store %arg12[%75, %c0_34, %c0_35], %78 {strides = array<i32>} : memref<8x8x32xf32, #tpu.memory_space<vmem>>, vector<1x8x32xf32>,
    %c2_i32 = arith.constant 2 : i32
    %79 = arith.index_cast %c2_i32 : i32 to index
    %c0_36 = arith.constant 0 : index
    %c0_37 = arith.constant 0 : index
    %80 = vector.load %arg2[%79, %c0_36, %c0_37] : memref<8x8x1xf32, #tpu.memory_space<vmem>>, vector<1x8x1xf32>
    %81 = vector.shape_cast %80 : vector<1x8x1xf32> to vector<8x1xf32>
    %cst_38 = arith.constant 1.000000e+00 : f32
    %82 = vector.broadcast %cst_38 : f32 to vector<8x1xf32>
    %83 = arith.subf %82, %81 : vector<8x1xf32>
    %84 = arith.index_cast %c2_i32 : i32 to index
    %c0_39 = arith.constant 0 : index
    %c0_40 = arith.constant 0 : index
    %85 = vector.load %arg11[%84, %c0_39, %c0_40] : memref<8x8x128xf32, #tpu.memory_space<vmem>>, vector<1x8x128xf32>
    %86 = vector.shape_cast %85 : vector<1x8x128xf32> to vector<8x128xf32>
    %87 = vector.broadcast %83 : vector<8x1xf32> to vector<8x32xf32>
    %88 = arith.mulf %87, %74 : vector<8x32xf32>
    %cst_41 = arith.constant dense<0.000000e+00> : vector<8x128xf32>
    %89 = tpu.matmul %88, %12, %cst_41 {dimension_numbers = #tpu.dot_dimension_numbers<[1], [0], [0], [1], [0, 0, 1, 1], [], []>} : vector<8x32xf32>, vector<32x128xf32>, vector<8x128xf32> -> vector<8x128xf32>
    %90 = arith.addf %86, %89 : vector<8x128xf32>
    %91 = math.tanh %90 : vector<8x128xf32>
    %cst_42 = arith.constant 5.000000e-01 : f32
    %92 = vector.broadcast %cst_42 : f32 to vector<8x128xf32>
    %93 = arith.mulf %92, %91 : vector<8x128xf32>
    %cst_43 = arith.constant 5.000000e-01 : f32
    %94 = vector.broadcast %cst_43 : f32 to vector<8x128xf32>
    %95 = arith.addf %93, %94 : vector<8x128xf32>
    %96 = vector.extract_strided_slice %95 {offsets = [0, 32], sizes = [8, 32], strides = [1, 1]} : vector<8x128xf32> to vector<8x32xf32>
    %97 = vector.broadcast %83 : vector<8x1xf32> to vector<8x32xf32>
    %98 = arith.mulf %97, %71 : vector<8x32xf32>
    %99 = arith.mulf %96, %98 : vector<8x32xf32>
    %100 = vector.extract_strided_slice %95 {offsets = [0, 0], sizes = [8, 32], strides = [1, 1]} : vector<8x128xf32> to vector<8x32xf32>
    %101 = vector.extract_strided_slice %91 {offsets = [0, 64], sizes = [8, 32], strides = [1, 1]} : vector<8x128xf32> to vector<8x32xf32>
    %102 = arith.mulf %100, %101 : vector<8x32xf32>
    %103 = arith.addf %99, %102 : vector<8x32xf32>
    %104 = vector.extract_strided_slice %95 {offsets = [0, 96], sizes = [8, 32], strides = [1, 1]} : vector<8x128xf32> to vector<8x32xf32>
    %105 = math.tanh %103 : vector<8x32xf32>
    %106 = arith.mulf %104, %105 : vector<8x32xf32>
    %107 = arith.index_cast %c2_i32 : i32 to index
    %c0_44 = arith.constant 0 : index
    %c0_45 = arith.constant 0 : index
    %108 = vector.load %arg12[%107, %c0_44, %c0_45] : memref<8x8x32xf32, #tpu.memory_space<vmem>>, vector<1x8x32xf32>
    %109 = vector.shape_cast %108 : vector<1x8x32xf32> to vector<8x32xf32>
    %110 = vector.shape_cast %106 : vector<8x32xf32> to vector<1x8x32xf32>
    tpu.vector_store %arg12[%107, %c0_44, %c0_45], %110 {strides = array<i32>} : memref<8x8x32xf32, #tpu.memory_space<vmem>>, vector<1x8x32xf32>,
    %c3_i32 = arith.constant 3 : i32
    %111 = arith.index_cast %c3_i32 : i32 to index
    %c0_46 = arith.constant 0 : index
    %c0_47 = arith.constant 0 : index
    %112 = vector.load %arg2[%111, %c0_46, %c0_47] : memref<8x8x1xf32, #tpu.memory_space<vmem>>, vector<1x8x1xf32>
    %113 = vector.shape_cast %112 : vector<1x8x1xf32> to vector<8x1xf32>
    %cst_48 = arith.constant 1.000000e+00 : f32
    %114 = vector.broadcast %cst_48 : f32 to vector<8x1xf32>
    %115 = arith.subf %114, %113 : vector<8x1xf32>
    %116 = arith.index_cast %c3_i32 : i32 to index
    %c0_49 = arith.constant 0 : index
    %c0_50 = arith.constant 0 : index
    %117 = vector.load %arg11[%116, %c0_49, %c0_50] : memref<8x8x128xf32, #tpu.memory_space<vmem>>, vector<1x8x128xf32>
    %118 = vector.shape_cast %117 : vector<1x8x128xf32> to vector<8x128xf32>
    %119 = vector.broadcast %115 : vector<8x1xf32> to vector<8x32xf32>
    %120 = arith.mulf %119, %106 : vector<8x32xf32>
    %cst_51 = arith.constant dense<0.000000e+00> : vector<8x128xf32>
    %121 = tpu.matmul %120, %12, %cst_51 {dimension_numbers = #tpu.dot_dimension_numbers<[1], [0], [0], [1], [0, 0, 1, 1], [], []>} : vector<8x32xf32>, vector<32x128xf32>, vector<8x128xf32> -> vector<8x128xf32>
    %122 = arith.addf %118, %121 : vector<8x128xf32>
    %123 = math.tanh %122 : vector<8x128xf32>
    %cst_52 = arith.constant 5.000000e-01 : f32
    %124 = vector.broadcast %cst_52 : f32 to vector<8x128xf32>
    %125 = arith.mulf %124, %123 : vector<8x128xf32>
    %cst_53 = arith.constant 5.000000e-01 : f32
    %126 = vector.broadcast %cst_53 : f32 to vector<8x128xf32>
    %127 = arith.addf %125, %126 : vector<8x128xf32>
    %128 = vector.extract_strided_slice %127 {offsets = [0, 32], sizes = [8, 32], strides = [1, 1]} : vector<8x128xf32> to vector<8x32xf32>
    %129 = vector.broadcast %115 : vector<8x1xf32> to vector<8x32xf32>
    %130 = arith.mulf %129, %103 : vector<8x32xf32>
    %131 = arith.mulf %128, %130 : vector<8x32xf32>
    %132 = vector.extract_strided_slice %127 {offsets = [0, 0], sizes = [8, 32], strides = [1, 1]} : vector<8x128xf32> to vector<8x32xf32>
    %133 = vector.extract_strided_slice %123 {offsets = [0, 64], sizes = [8, 32], strides = [1, 1]} : vector<8x128xf32> to vector<8x32xf32>
    %134 = arith.mulf %132, %133 : vector<8x32xf32>
    %135 = arith.addf %131, %134 : vector<8x32xf32>
    %136 = vector.extract_strided_slice %127 {offsets = [0, 96], sizes = [8, 32], strides = [1, 1]} : vector<8x128xf32> to vector<8x32xf32>
    %137 = math.tanh %135 : vector<8x32xf32>
    %138 = arith.mulf %136, %137 : vector<8x32xf32>
    %139 = arith.index_cast %c3_i32 : i32 to index
    %c0_54 = arith.constant 0 : index
    %c0_55 = arith.constant 0 : index
    %140 = vector.load %arg12[%139, %c0_54, %c0_55] : memref<8x8x32xf32, #tpu.memory_space<vmem>>, vector<1x8x32xf32>
    %141 = vector.shape_cast %140 : vector<1x8x32xf32> to vector<8x32xf32>
    %142 = vector.shape_cast %138 : vector<8x32xf32> to vector<1x8x32xf32>
    tpu.vector_store %arg12[%139, %c0_54, %c0_55], %142 {strides = array<i32>} : memref<8x8x32xf32, #tpu.memory_space<vmem>>, vector<1x8x32xf32>,
    %c4_i32 = arith.constant 4 : i32
    %143 = arith.index_cast %c4_i32 : i32 to index
    %c0_56 = arith.constant 0 : index
    %c0_57 = arith.constant 0 : index
    %144 = vector.load %arg2[%143, %c0_56, %c0_57] : memref<8x8x1xf32, #tpu.memory_space<vmem>>, vector<1x8x1xf32>
    %145 = vector.shape_cast %144 : vector<1x8x1xf32> to vector<8x1xf32>
    %cst_58 = arith.constant 1.000000e+00 : f32
    %146 = vector.broadcast %cst_58 : f32 to vector<8x1xf32>
    %147 = arith.subf %146, %145 : vector<8x1xf32>
    %148 = arith.index_cast %c4_i32 : i32 to index
    %c0_59 = arith.constant 0 : index
    %c0_60 = arith.constant 0 : index
    %149 = vector.load %arg11[%148, %c0_59, %c0_60] : memref<8x8x128xf32, #tpu.memory_space<vmem>>, vector<1x8x128xf32>
    %150 = vector.shape_cast %149 : vector<1x8x128xf32> to vector<8x128xf32>
    %151 = vector.broadcast %147 : vector<8x1xf32> to vector<8x32xf32>
    %152 = arith.mulf %151, %138 : vector<8x32xf32>
    %cst_61 = arith.constant dense<0.000000e+00> : vector<8x128xf32>
    %153 = tpu.matmul %152, %12, %cst_61 {dimension_numbers = #tpu.dot_dimension_numbers<[1], [0], [0], [1], [0, 0, 1, 1], [], []>} : vector<8x32xf32>, vector<32x128xf32>, vector<8x128xf32> -> vector<8x128xf32>
    %154 = arith.addf %150, %153 : vector<8x128xf32>
    %155 = math.tanh %154 : vector<8x128xf32>
    %cst_62 = arith.constant 5.000000e-01 : f32
    %156 = vector.broadcast %cst_62 : f32 to vector<8x128xf32>
    %157 = arith.mulf %156, %155 : vector<8x128xf32>
    %cst_63 = arith.constant 5.000000e-01 : f32
    %158 = vector.broadcast %cst_63 : f32 to vector<8x128xf32>
    %159 = arith.addf %157, %158 : vector<8x128xf32>
    %160 = vector.extract_strided_slice %159 {offsets = [0, 32], sizes = [8, 32], strides = [1, 1]} : vector<8x128xf32> to vector<8x32xf32>
    %161 = vector.broadcast %147 : vector<8x1xf32> to vector<8x32xf32>
    %162 = arith.mulf %161, %135 : vector<8x32xf32>
    %163 = arith.mulf %160, %162 : vector<8x32xf32>
    %164 = vector.extract_strided_slice %159 {offsets = [0, 0], sizes = [8, 32], strides = [1, 1]} : vector<8x128xf32> to vector<8x32xf32>
    %165 = vector.extract_strided_slice %155 {offsets = [0, 64], sizes = [8, 32], strides = [1, 1]} : vector<8x128xf32> to vector<8x32xf32>
    %166 = arith.mulf %164, %165 : vector<8x32xf32>
    %167 = arith.addf %163, %166 : vector<8x32xf32>
    %168 = vector.extract_strided_slice %159 {offsets = [0, 96], sizes = [8, 32], strides = [1, 1]} : vector<8x128xf32> to vector<8x32xf32>
    %169 = math.tanh %167 : vector<8x32xf32>
    %170 = arith.mulf %168, %169 : vector<8x32xf32>
    %171 = arith.index_cast %c4_i32 : i32 to index
    %c0_64 = arith.constant 0 : index
    %c0_65 = arith.constant 0 : index
    %172 = vector.load %arg12[%171, %c0_64, %c0_65] : memref<8x8x32xf32, #tpu.memory_space<vmem>>, vector<1x8x32xf32>
    %173 = vector.shape_cast %172 : vector<1x8x32xf32> to vector<8x32xf32>
    %174 = vector.shape_cast %170 : vector<8x32xf32> to vector<1x8x32xf32>
    tpu.vector_store %arg12[%171, %c0_64, %c0_65], %174 {strides = array<i32>} : memref<8x8x32xf32, #tpu.memory_space<vmem>>, vector<1x8x32xf32>,
    %c5_i32 = arith.constant 5 : i32
    %175 = arith.index_cast %c5_i32 : i32 to index
    %c0_66 = arith.constant 0 : index
    %c0_67 = arith.constant 0 : index
    %176 = vector.load %arg2[%175, %c0_66, %c0_67] : memref<8x8x1xf32, #tpu.memory_space<vmem>>, vector<1x8x1xf32>
    %177 = vector.shape_cast %176 : vector<1x8x1xf32> to vector<8x1xf32>
    %cst_68 = arith.constant 1.000000e+00 : f32
    %178 = vector.broadcast %cst_68 : f32 to vector<8x1xf32>
    %179 = arith.subf %178, %177 : vector<8x1xf32>
    %180 = arith.index_cast %c5_i32 : i32 to index
    %c0_69 = arith.constant 0 : index
    %c0_70 = arith.constant 0 : index
    %181 = vector.load %arg11[%180, %c0_69, %c0_70] : memref<8x8x128xf32, #tpu.memory_space<vmem>>, vector<1x8x128xf32>
    %182 = vector.shape_cast %181 : vector<1x8x128xf32> to vector<8x128xf32>
    %183 = vector.broadcast %179 : vector<8x1xf32> to vector<8x32xf32>
    %184 = arith.mulf %183, %170 : vector<8x32xf32>
    %cst_71 = arith.constant dense<0.000000e+00> : vector<8x128xf32>
    %185 = tpu.matmul %184, %12, %cst_71 {dimension_numbers = #tpu.dot_dimension_numbers<[1], [0], [0], [1], [0, 0, 1, 1], [], []>} : vector<8x32xf32>, vector<32x128xf32>, vector<8x128xf32> -> vector<8x128xf32>
    %186 = arith.addf %182, %185 : vector<8x128xf32>
    %187 = math.tanh %186 : vector<8x128xf32>
    %cst_72 = arith.constant 5.000000e-01 : f32
    %188 = vector.broadcast %cst_72 : f32 to vector<8x128xf32>
    %189 = arith.mulf %188, %187 : vector<8x128xf32>
    %cst_73 = arith.constant 5.000000e-01 : f32
    %190 = vector.broadcast %cst_73 : f32 to vector<8x128xf32>
    %191 = arith.addf %189, %190 : vector<8x128xf32>
    %192 = vector.extract_strided_slice %191 {offsets = [0, 32], sizes = [8, 32], strides = [1, 1]} : vector<8x128xf32> to vector<8x32xf32>
    %193 = vector.broadcast %179 : vector<8x1xf32> to vector<8x32xf32>
    %194 = arith.mulf %193, %167 : vector<8x32xf32>
    %195 = arith.mulf %192, %194 : vector<8x32xf32>
    %196 = vector.extract_strided_slice %191 {offsets = [0, 0], sizes = [8, 32], strides = [1, 1]} : vector<8x128xf32> to vector<8x32xf32>
    %197 = vector.extract_strided_slice %187 {offsets = [0, 64], sizes = [8, 32], strides = [1, 1]} : vector<8x128xf32> to vector<8x32xf32>
    %198 = arith.mulf %196, %197 : vector<8x32xf32>
    %199 = arith.addf %195, %198 : vector<8x32xf32>
    %200 = vector.extract_strided_slice %191 {offsets = [0, 96], sizes = [8, 32], strides = [1, 1]} : vector<8x128xf32> to vector<8x32xf32>
    %201 = math.tanh %199 : vector<8x32xf32>
    %202 = arith.mulf %200, %201 : vector<8x32xf32>
    %203 = arith.index_cast %c5_i32 : i32 to index
    %c0_74 = arith.constant 0 : index
    %c0_75 = arith.constant 0 : index
    %204 = vector.load %arg12[%203, %c0_74, %c0_75] : memref<8x8x32xf32, #tpu.memory_space<vmem>>, vector<1x8x32xf32>
    %205 = vector.shape_cast %204 : vector<1x8x32xf32> to vector<8x32xf32>
    %206 = vector.shape_cast %202 : vector<8x32xf32> to vector<1x8x32xf32>
    tpu.vector_store %arg12[%203, %c0_74, %c0_75], %206 {strides = array<i32>} : memref<8x8x32xf32, #tpu.memory_space<vmem>>, vector<1x8x32xf32>,
    %c6_i32 = arith.constant 6 : i32
    %207 = arith.index_cast %c6_i32 : i32 to index
    %c0_76 = arith.constant 0 : index
    %c0_77 = arith.constant 0 : index
    %208 = vector.load %arg2[%207, %c0_76, %c0_77] : memref<8x8x1xf32, #tpu.memory_space<vmem>>, vector<1x8x1xf32>
    %209 = vector.shape_cast %208 : vector<1x8x1xf32> to vector<8x1xf32>
    %cst_78 = arith.constant 1.000000e+00 : f32
    %210 = vector.broadcast %cst_78 : f32 to vector<8x1xf32>
    %211 = arith.subf %210, %209 : vector<8x1xf32>
    %212 = arith.index_cast %c6_i32 : i32 to index
    %c0_79 = arith.constant 0 : index
    %c0_80 = arith.constant 0 : index
    %213 = vector.load %arg11[%212, %c0_79, %c0_80] : memref<8x8x128xf32, #tpu.memory_space<vmem>>, vector<1x8x128xf32>
    %214 = vector.shape_cast %213 : vector<1x8x128xf32> to vector<8x128xf32>
    %215 = vector.broadcast %211 : vector<8x1xf32> to vector<8x32xf32>
    %216 = arith.mulf %215, %202 : vector<8x32xf32>
    %cst_81 = arith.constant dense<0.000000e+00> : vector<8x128xf32>
    %217 = tpu.matmul %216, %12, %cst_81 {dimension_numbers = #tpu.dot_dimension_numbers<[1], [0], [0], [1], [0, 0, 1, 1], [], []>} : vector<8x32xf32>, vector<32x128xf32>, vector<8x128xf32> -> vector<8x128xf32>
    %218 = arith.addf %214, %217 : vector<8x128xf32>
    %219 = math.tanh %218 : vector<8x128xf32>
    %cst_82 = arith.constant 5.000000e-01 : f32
    %220 = vector.broadcast %cst_82 : f32 to vector<8x128xf32>
    %221 = arith.mulf %220, %219 : vector<8x128xf32>
    %cst_83 = arith.constant 5.000000e-01 : f32
    %222 = vector.broadcast %cst_83 : f32 to vector<8x128xf32>
    %223 = arith.addf %221, %222 : vector<8x128xf32>
    %224 = vector.extract_strided_slice %223 {offsets = [0, 32], sizes = [8, 32], strides = [1, 1]} : vector<8x128xf32> to vector<8x32xf32>
    %225 = vector.broadcast %211 : vector<8x1xf32> to vector<8x32xf32>
    %226 = arith.mulf %225, %199 : vector<8x32xf32>
    %227 = arith.mulf %224, %226 : vector<8x32xf32>
    %228 = vector.extract_strided_slice %223 {offsets = [0, 0], sizes = [8, 32], strides = [1, 1]} : vector<8x128xf32> to vector<8x32xf32>
    %229 = vector.extract_strided_slice %219 {offsets = [0, 64], sizes = [8, 32], strides = [1, 1]} : vector<8x128xf32> to vector<8x32xf32>
    %230 = arith.mulf %228, %229 : vector<8x32xf32>
    %231 = arith.addf %227, %230 : vector<8x32xf32>
    %232 = vector.extract_strided_slice %223 {offsets = [0, 96], sizes = [8, 32], strides = [1, 1]} : vector<8x128xf32> to vector<8x32xf32>
    %233 = math.tanh %231 : vector<8x32xf32>
    %234 = arith.mulf %232, %233 : vector<8x32xf32>
    %235 = arith.index_cast %c6_i32 : i32 to index
    %c0_84 = arith.constant 0 : index
    %c0_85 = arith.constant 0 : index
    %236 = vector.load %arg12[%235, %c0_84, %c0_85] : memref<8x8x32xf32, #tpu.memory_space<vmem>>, vector<1x8x32xf32>
    %237 = vector.shape_cast %236 : vector<1x8x32xf32> to vector<8x32xf32>
    %238 = vector.shape_cast %234 : vector<8x32xf32> to vector<1x8x32xf32>
    tpu.vector_store %arg12[%235, %c0_84, %c0_85], %238 {strides = array<i32>} : memref<8x8x32xf32, #tpu.memory_space<vmem>>, vector<1x8x32xf32>,
    %c7_i32 = arith.constant 7 : i32
    %239 = arith.index_cast %c7_i32 : i32 to index
    %c0_86 = arith.constant 0 : index
    %c0_87 = arith.constant 0 : index
    %240 = vector.load %arg2[%239, %c0_86, %c0_87] : memref<8x8x1xf32, #tpu.memory_space<vmem>>, vector<1x8x1xf32>
    %241 = vector.shape_cast %240 : vector<1x8x1xf32> to vector<8x1xf32>
    %cst_88 = arith.constant 1.000000e+00 : f32
    %242 = vector.broadcast %cst_88 : f32 to vector<8x1xf32>
    %243 = arith.subf %242, %241 : vector<8x1xf32>
    %244 = arith.index_cast %c7_i32 : i32 to index
    %c0_89 = arith.constant 0 : index
    %c0_90 = arith.constant 0 : index
    %245 = vector.load %arg11[%244, %c0_89, %c0_90] : memref<8x8x128xf32, #tpu.memory_space<vmem>>, vector<1x8x128xf32>
    %246 = vector.shape_cast %245 : vector<1x8x128xf32> to vector<8x128xf32>
    %247 = vector.broadcast %243 : vector<8x1xf32> to vector<8x32xf32>
    %248 = arith.mulf %247, %234 : vector<8x32xf32>
    %cst_91 = arith.constant dense<0.000000e+00> : vector<8x128xf32>
    %249 = tpu.matmul %248, %12, %cst_91 {dimension_numbers = #tpu.dot_dimension_numbers<[1], [0], [0], [1], [0, 0, 1, 1], [], []>} : vector<8x32xf32>, vector<32x128xf32>, vector<8x128xf32> -> vector<8x128xf32>
    %250 = arith.addf %246, %249 : vector<8x128xf32>
    %251 = math.tanh %250 : vector<8x128xf32>
    %cst_92 = arith.constant 5.000000e-01 : f32
    %252 = vector.broadcast %cst_92 : f32 to vector<8x128xf32>
    %253 = arith.mulf %252, %251 : vector<8x128xf32>
    %cst_93 = arith.constant 5.000000e-01 : f32
    %254 = vector.broadcast %cst_93 : f32 to vector<8x128xf32>
    %255 = arith.addf %253, %254 : vector<8x128xf32>
    %256 = vector.extract_strided_slice %255 {offsets = [0, 32], sizes = [8, 32], strides = [1, 1]} : vector<8x128xf32> to vector<8x32xf32>
    %257 = vector.broadcast %243 : vector<8x1xf32> to vector<8x32xf32>
    %258 = arith.mulf %257, %231 : vector<8x32xf32>
    %259 = arith.mulf %256, %258 : vector<8x32xf32>
    %260 = vector.extract_strided_slice %255 {offsets = [0, 0], sizes = [8, 32], strides = [1, 1]} : vector<8x128xf32> to vector<8x32xf32>
    %261 = vector.extract_strided_slice %251 {offsets = [0, 64], sizes = [8, 32], strides = [1, 1]} : vector<8x128xf32> to vector<8x32xf32>
    %262 = arith.mulf %260, %261 : vector<8x32xf32>
    %263 = arith.addf %259, %262 : vector<8x32xf32>
    %264 = vector.extract_strided_slice %255 {offsets = [0, 96], sizes = [8, 32], strides = [1, 1]} : vector<8x128xf32> to vector<8x32xf32>
    %265 = math.tanh %263 : vector<8x32xf32>
    %266 = arith.mulf %264, %265 : vector<8x32xf32>
    %267 = arith.index_cast %c7_i32 : i32 to index
    %c0_94 = arith.constant 0 : index
    %c0_95 = arith.constant 0 : index
    %268 = vector.load %arg12[%267, %c0_94, %c0_95] : memref<8x8x32xf32, #tpu.memory_space<vmem>>, vector<1x8x32xf32>
    %269 = vector.shape_cast %268 : vector<1x8x32xf32> to vector<8x32xf32>
    %270 = vector.shape_cast %266 : vector<8x32xf32> to vector<1x8x32xf32>
    tpu.vector_store %arg12[%267, %c0_94, %c0_95], %270 {strides = array<i32>} : memref<8x8x32xf32, #tpu.memory_space<vmem>>, vector<1x8x32xf32>,
    %c8_i32 = arith.constant 8 : i32
    %c0_96 = arith.constant 0 : index
    %c0_97 = arith.constant 0 : index
    %271 = vector.load %arg9[%c0_96, %c0_97] : memref<8x32xf32, #tpu.memory_space<vmem>>, vector<8x32xf32>
    tpu.vector_store %arg9[%c0_96, %c0_97], %266 {strides = array<i32>} : memref<8x32xf32, #tpu.memory_space<vmem>>, vector<8x32xf32>,
    %c0_98 = arith.constant 0 : index
    %c0_99 = arith.constant 0 : index
    %272 = vector.load %arg10[%c0_98, %c0_99] : memref<8x32xf32, #tpu.memory_space<vmem>>, vector<8x32xf32>
    tpu.vector_store %arg10[%c0_98, %c0_99], %263 {strides = array<i32>} : memref<8x32xf32, #tpu.memory_space<vmem>>, vector<8x32xf32>,
    %c0_100 = arith.constant 0 : index
    %c0_101 = arith.constant 0 : index
    %c0_102 = arith.constant 0 : index
    %273 = vector.load %arg12[%c0_100, %c0_101, %c0_102] : memref<8x8x32xf32, #tpu.memory_space<vmem>>, vector<8x8x32xf32>
    %274 = vector.shape_cast %273 : vector<8x8x32xf32> to vector<64x32xf32>
    %275 = arith.truncf %274 : vector<64x32xf32> to vector<64x32xbf16>
    %c0_103 = arith.constant 0 : index
    %c0_104 = arith.constant 0 : index
    %276 = vector.load %arg6[%c0_103, %c0_104] : memref<96x128xbf16, #tpu.memory_space<vmem>>, vector<32x128xbf16>
    %cst_105 = arith.constant dense<0.000000e+00> : vector<64x128xf32>
    %277 = tpu.matmul %275, %276, %cst_105 {dimension_numbers = #tpu.dot_dimension_numbers<[1], [0], [0], [1], [0, 0, 1, 1], [], []>} : vector<64x32xbf16>, vector<32x128xbf16>, vector<64x128xf32> -> vector<64x128xf32>
    %c1 = arith.constant 1 : index
    %c0_106 = arith.constant 0 : index
    %278 = vector.load %arg7[%c1, %c0_106] : memref<8x128xf32, #tpu.memory_space<vmem>>, vector<1x128xf32>
    %279 = vector.broadcast %278 : vector<1x128xf32> to vector<64x128xf32>
    %280 = arith.addf %277, %279 : vector<64x128xf32>
    %281 = math.tanh %280 : vector<64x128xf32>
    %282 = vector.extract_strided_slice %281 {offsets = [0, 0], sizes = [64, 32], strides = [1, 1]} : vector<64x128xf32> to vector<64x32xf32>
    %283 = arith.truncf %282 : vector<64x32xf32> to vector<64x32xbf16>
    %c32 = arith.constant 32 : index
    %c0_107 = arith.constant 0 : index
    %284 = vector.load %arg6[%c32, %c0_107] : memref<96x128xbf16, #tpu.memory_space<vmem>>, vector<32x128xbf16>
    %cst_108 = arith.constant dense<0.000000e+00> : vector<64x128xf32>
    %285 = tpu.matmul %283, %284, %cst_108 {dimension_numbers = #tpu.dot_dimension_numbers<[1], [0], [0], [1], [0, 0, 1, 1], [], []>} : vector<64x32xbf16>, vector<32x128xbf16>, vector<64x128xf32> -> vector<64x128xf32>
    %c2 = arith.constant 2 : index
    %c0_109 = arith.constant 0 : index
    %286 = vector.load %arg7[%c2, %c0_109] : memref<8x128xf32, #tpu.memory_space<vmem>>, vector<1x128xf32>
    %287 = vector.broadcast %286 : vector<1x128xf32> to vector<64x128xf32>
    %288 = arith.addf %285, %287 : vector<64x128xf32>
    %289 = math.tanh %288 : vector<64x128xf32>
    %290 = vector.extract_strided_slice %289 {offsets = [0, 0], sizes = [64, 32], strides = [1, 1]} : vector<64x128xf32> to vector<64x32xf32>
    %291 = arith.truncf %290 : vector<64x32xf32> to vector<64x32xbf16>
    %c64 = arith.constant 64 : index
    %c0_110 = arith.constant 0 : index
    %292 = vector.load %arg6[%c64, %c0_110] : memref<96x128xbf16, #tpu.memory_space<vmem>>, vector<32x128xbf16>
    %cst_111 = arith.constant dense<0.000000e+00> : vector<64x128xf32>
    %293 = tpu.matmul %291, %292, %cst_111 {dimension_numbers = #tpu.dot_dimension_numbers<[1], [0], [0], [1], [0, 0, 1, 1], [], []>} : vector<64x32xbf16>, vector<32x128xbf16>, vector<64x128xf32> -> vector<64x128xf32>
    %c3 = arith.constant 3 : index
    %c0_112 = arith.constant 0 : index
    %294 = vector.load %arg7[%c3, %c0_112] : memref<8x128xf32, #tpu.memory_space<vmem>>, vector<1x128xf32>
    %295 = vector.broadcast %294 : vector<1x128xf32> to vector<64x128xf32>
    %296 = arith.addf %293, %295 : vector<64x128xf32>
    %297 = vector.shape_cast %296 : vector<64x128xf32> to vector<8x8x128xf32>
    %c0_113 = arith.constant 0 : index
    %c0_114 = arith.constant 0 : index
    %c0_115 = arith.constant 0 : index
    %298 = vector.load %arg8[%c0_113, %c0_114, %c0_115] : memref<8x8x128xf32, #tpu.memory_space<vmem>>, vector<8x8x128xf32>
    tpu.vector_store %arg8[%c0_113, %c0_114, %c0_115], %297 {strides = array<i32>} : memref<8x8x128xf32, #tpu.memory_space<vmem>>, vector<8x8x128xf32>,
    return
  }
  func.func @transform_0(%arg0: i32) -> (i32, i32, i32) {
    %c0_i32 = arith.constant 0 : i32
    %c0_i32_0 = arith.constant 0 : i32
    %c0_i32_1 = arith.constant 0 : i32
    return %arg0, %c0_i32, %c0_i32_0 : i32, i32, i32
  }
  func.func @transform_1(%arg0: i32) -> (i32, i32, i32) {
    %c0_i32 = arith.constant 0 : i32
    %c0_i32_0 = arith.constant 0 : i32
    %c0_i32_1 = arith.constant 0 : i32
    return %arg0, %c0_i32, %c0_i32_0 : i32, i32, i32
  }
  func.func @transform_2(%arg0: i32) -> (i32, i32) {
    %c0_i32 = arith.constant 0 : i32
    %c0_i32_0 = arith.constant 0 : i32
    %c0_i32_1 = arith.constant 0 : i32
    return %c0_i32, %c0_i32_0 : i32, i32
  }
  func.func @transform_3(%arg0: i32) -> (i32, i32) {
    %c0_i32 = arith.constant 0 : i32
    %c0_i32_0 = arith.constant 0 : i32
    %c0_i32_1 = arith.constant 0 : i32
    return %c0_i32, %c0_i32_0 : i32, i32
  }
  func.func @transform_4(%arg0: i32) -> (i32, i32) {
    %c0_i32 = arith.constant 0 : i32
    %c0_i32_0 = arith.constant 0 : i32
    %c0_i32_1 = arith.constant 0 : i32
    return %c0_i32, %c0_i32_0 : i32, i32
  }
  func.func @transform_5(%arg0: i32) -> (i32, i32) {
    %c0_i32 = arith.constant 0 : i32
    %c0_i32_0 = arith.constant 0 : i32
    %c0_i32_1 = arith.constant 0 : i32
    return %c0_i32, %c0_i32_0 : i32, i32
  }
  func.func @transform_6(%arg0: i32) -> (i32, i32) {
    %c0_i32 = arith.constant 0 : i32
    %c0_i32_0 = arith.constant 0 : i32
    %c0_i32_1 = arith.constant 0 : i32
    return %c0_i32, %c0_i32_0 : i32, i32
  }
  func.func @transform_7(%arg0: i32) -> (i32, i32, i32) {
    %c0_i32 = arith.constant 0 : i32
    %c0_i32_0 = arith.constant 0 : i32
    %c0_i32_1 = arith.constant 0 : i32
    return %arg0, %c0_i32, %c0_i32_0 : i32, i32, i32
  }
  func.func @transform_8(%arg0: i32) -> (i32, i32) {
    %c0_i32 = arith.constant 0 : i32
    %c0_i32_0 = arith.constant 0 : i32
    %c0_i32_1 = arith.constant 0 : i32
    return %c0_i32, %c0_i32_0 : i32, i32
  }
  func.func @transform_9(%arg0: i32) -> (i32, i32) {
    %c0_i32 = arith.constant 0 : i32
    %c0_i32_0 = arith.constant 0 : i32
    %c0_i32_1 = arith.constant 0 : i32
    return %c0_i32, %c0_i32_0 : i32, i32
  }
}

</mosaic_0001>

<bundles_post_ra>
// kernel: recurrent_policy_rollout.1
= control target key start
LH: loop header
LB: loop body
LE: loop exit
PB: predicated region body
PF: predicated region fallthrough
CT: control target
= control target key end

     0   :  { %v1852_v0 = vmov 0   ;;  %vm54_vm0 = vcmask 130048   ;;  %vm35_vm1 = vcmask 261120   ;;  %v1853_v16 = vmov 0.0|0.0   ;;  %s1856_s23 = smov 32   ;;  %s1857_s28 = smov 64   ;;  %s2231_s1 = inlined_call_operand.vmem [shape: f32[8,8,1], index: 1, kind: input, shape index: {}]   ;;  %s2232_s4 = inlined_call_operand.vmem [shape: f32[48,128], index: 4, kind: input, shape index: {}]   ;;  %s2233_s0 = inlined_call_operand.vmem [shape: f32[8,8,16], index: 0, kind: input, shape index: {}]   ;;  %s2234_s2 = inlined_call_operand.vmem [shape: f32[8,32], index: 2, kind: input, shape index: {}, may-alias: {2,8}]   ;;  %s2235_s3 = inlined_call_operand.vmem [shape: f32[8,32], index: 3, kind: input, shape index: {}, may-alias: {3,9}]   ;;  %s2236_s8 = inlined_call_operand.vmem [shape: f32[8,32], index: 8, kind: output, shape index: {1}, may-alias: {2,8}]   ;;  %s2237_s9 = inlined_call_operand.vmem [shape: f32[8,32], index: 9, kind: output, shape index: {2}, may-alias: {3,9}]   ;;  %s2238_s6 = inlined_call_operand.vmem [shape: f32[8,128], index: 6, kind: input, shape index: {}]   ;;  %s2239_s5 = inlined_call_operand.vmem [shape: bf16[96,128], index: 5, kind: input, shape index: {}]   ;;  %s2240_s7 = inlined_call_operand.vmem [shape: f32[8,8,128], index: 7, kind: output, shape index: {0}]  }
   0x1   :  { %1780 = vset.pattern.permute.xlu0 %v1852_v0  ;;  %v198_v1 = vld [vmem:[%s2231_s1] sm:$0xff]  ;;  %v48_v3 = vld [vmem:[%s2232_s4 + $0x8] sm:$0xff]  ;;  %1781 = vset.pattern.permute.xlu1 %v1852_v0  ;;  %v192_v6 = vld [vmem:[%s2232_s4 + $0x10] sm:$0xff]  ;;  %vm1854_vm2 = vmmov 0   ;;  %v1855_v21 = vmov 0.0  }
   0x2   :  { %v47_v2 = vld [vmem:[%s2232_s4] sm:$0xff]  ;;  %v199_v4 = vsub.f32 1.0, %v198_v1  ;;  %v193_v7 = vld [vmem:[%s2232_s4 + $0x18] sm:$0xff]  ;;  %v44_v11 = vld [vmem:[%s2233_s0 + $0x28] sm:$0xff] }
   0x3   :  { %v1719_v5 = vpack.c.bf16 %v48_v3, %v47_v2  ;;  %v43_v8 = vld [vmem:[%s2233_s0 + $0x20] sm:$0xff]  ;;  %v1930_v10 = vpack.c.bf16 %v193_v7, %v192_v6  ;;  %v195_v15 = vld [vmem:[%s2232_s4 + $0x28] sm:$0xff]  ;;  %v45_v17 = vld [vmem:[%s2233_s0 + $0x30] sm:$0xff] }
   0x4   :  { %203 = vperm.xlu0 %1780, %v199_v4   ;;  %v39_v9 = vld [vmem:[%s2233_s0] sm:$0xff]  ;;  %1589 = vmatprep.mubr.msk.f32.mxu1 %vm54_vm0, %v43_v8  ;;  %v40_v18 = vld [vmem:[%s2233_s0 + $0x8] sm:$0xff]  ;;  %v46_v20 = vld [vmem:[%s2233_s0 + $0x38] sm:$0xff] }
   0x5   :  { %1771 = vmatprep.subr.bf16.mxu1 %v1719_v5  ;;  %v34_v12 = vld [vmem:[%s2234_s2] sm:$0xff]  ;;  %1720 = vmatprep.subr.bf16.mxu0 %v1719_v5  ;;  %v1476_v38 = vld [vmem:[%s2231_s1 + $0x8] sm:$0xff]  ;;  %v1478_v59 = vld [vmem:[%s2231_s1 + $0x10] sm:$0xff] }
   0x6   :  { %1772 = vmatpush3.bf16.msra.mxu1 %v1719_v5  ;;  %v37_v13 = vld [vmem:[%s2235_s3] sm:$0xff]  ;;  %36 = vst.msk [vmem:[%s2236_s8] sm:$0xff] %vm35_vm1, %v34_v12  ;;  %1722 = vmatpush3.bf16.msra.mxu0 %v1719_v5  ;;  %v314_v40 = vsub.f32 1.0, %v1476_v38  ;;  %v428_v61 = vsub.f32 1.0, %v1478_v59  ;;  %v41_v6 = vld [vmem:[%s2233_s0 + $0x10] sm:$0xff]  ;;  %v42_v7 = vld [vmem:[%s2233_s0 + $0x18] sm:$0xff] }
   0x7   :  { %v194_v14 = vld [vmem:[%s2232_s4 + $0x20] sm:$0xff]  ;;  %1723 = vmatprep.subr.bf16.mxu1 %v1853_v16  ;;  %38 = vst.msk [vmem:[%s2237_s9] sm:$0xff] %vm35_vm1, %v37_v13  ;;  %1583 = vmatprep.mubr.msk.f32.mxu0 %vm54_vm0, %v39_v9 }
   0x8   :  { %1735 = vmatprep.subr.bf16.mxu0 %v1853_v16  ;;  %v1966_v19 = vpack.c.bf16 %v195_v15, %v194_v14  ;;  %v2009_v33 = vld [vmem:[%s2238_s6] ss:$0 sm:$0xff] }
   0x9   :  { %1590 = vmatmul.mubr.msk.f32.vlgmr.msra.gmra.mrb[0].mxu1 %vm54_vm0, %v44_v11  ;;  %1584 = vmatmul.mubr.msk.f32.vlgmr.msra.gmra.mrb[0].mxu0 %vm54_vm0, %v40_v18 }
   0xa   :  { %1725 = vmatpush3.bf16.msra.mxu1 %v1930_v10  ;;  %1592 = vmatprep.mubr.msk.f32.mxu1 %vm54_vm0, %v45_v17 }
   0xb   :  { %1726 = vmatprep.subr.bf16.mxu1 %v1853_v16  ;;  %1737 = vmatpush3.bf16.msra.mxu0 %v1930_v10 }
   0xc   :  { %1738 = vmatprep.subr.bf16.mxu0 %v1853_v16  ;;  %1586 = vmatprep.mubr.msk.f32.mxu0 %vm54_vm0, %v41_v6 }
   0xd   :  { %1593 = vmatmul.mubr.msk.f32.gmra.mrb[2].mxu1 %vm54_vm0, %v46_v20  ;;  %v196_v22 = vld [vmem:[%s2236_s8] sm:$0xff]  ;;  %1587 = vmatmul.mubr.msk.f32.gmra.mrb[2].mxu0 %vm54_vm0, %v42_v7 }
   0xe   :  { %1728 = vmatpush3.bf16.msra.mxu1 %v1966_v19  ;;  %1603 = vmatprep.mubr.msk.f32.mxu1 %vm1854_vm2, %v1855_v21  ;;  %v197_v23 = vld [vmem:[%s2237_s9] sm:$0xff] }
   0xf   :  { %1729 = vmatprep.subr.bf16.mxu1 %v1853_v16  ;;  %1740 = vmatpush3.bf16.msra.mxu0 %v1966_v19 }
  0x10   :  { %1747 = vmatprep.subr.bf16.mxu0 %v1853_v16  ;;  %1625 = vmatprep.mubr.msk.f32.mxu0 %vm1854_vm2, %v1855_v21 }
  0x83   :  { %v204_v24 = vpop.permute.xlu0 %203 }
  0x84   :  { %v206_v25 = vmul.f32 %v204_v24, %v196_v22  ;;  %v285_v26 = vmul.f32 %v204_v24, %v197_v23  ;;  %v1480_v24 = vld [vmem:[%s2231_s1 + $0x18] sm:$0xff] }
  0x86   :  { %287 = vrot.lane.b32.xlu1 %v285_v26, %s1856_s23  ;;  %1604 = vmatmul.mubr.msk.f32.vlgmr.msra.gmra.mrb[4].mxu1 %vm35_vm1, %v206_v25  ;;  %v542_v26 = vsub.f32 1.0, %v1480_v24 }
  0x87   :  { %1731 = vmatpush3.bf16.msra.mxu1 %v1930_v10  ;;  %1614 = vmatprep.mubr.msk.f32.mxu1 %vm1854_vm2, %v1855_v21 }
  0x88   :  { %1732 = vmatprep.subr.bf16.mxu1 %v1853_v16 }
  0x8b   :  { %1734 = vmatpush3.bf16.msra.mxu1 %v1966_v19 }
  0x8c   :  { %1741 = vmatprep.subr.bf16.mxu1 %v1853_v16 }
  0xdc   :  { %v1998_v27 = vpop.f32.mrb[0].mxu1  ;;  %v1585_v29 = vpop.f32.mrb[0].mxu0 }
  0xdd   :  { %v2000_v28 = vpop.f32.mrb[1].mxu1  ;;  %v145_v30 = vpop.f32.mrb[1].mxu0  ;;  %v151_v55 = vadd.f32 %v1585_v29, %v2009_v33 }
  0xde   :  { %v146_v34 = vadd.f32 %v2009_v33, %v145_v30 }
  0xe0   :  { %v2002_v31 = vpop.f32.mrb[2].mxu1  ;;  %v1588_v14 = vpop.f32.mrb[2].mxu0 }
  0xe1   :  { %v2004_v32 = vpop.f32.mrb[3].mxu1  ;;  %v155_v15 = vpop.f32.mrb[3].mxu0 }
  0xe2   :  { %v156_v18 = vadd.f32 %v2009_v33, %v155_v15 }
  0xf8   :  { %v288_v45 = vpop.permute.xlu1 %287 }
 0x159   :  { %v277_v35 = vpop.f32.mrb[4].mxu1 }
 0x15a   :  { %v281_v36 = vadd.f32 %v277_v35, %v146_v34  ;;  %v1605_v37 = vpop.f32.mrb[5].mxu1 }
 0x15c   :  { %1788 = vtanh.f32 %v281_v36 }
 0x166   :  { %v1789_v39 = vpop.eup %1788 }
 0x167   :  { %292 = vrot.lane.b32.xlu0 %v1789_v39, %s1857_s28  ;;  %v283_v41 = vmul.f32 0.5, %v1789_v39 }
 0x169   :  { %v284_v42 = vadd.f32 0.5, %v283_v41 }
 0x16b   :  { %319 = vperm.xlu0 %1780, %v314_v40   ;;  %v290_v46 = vmul.f32 %v288_v45, %v284_v42 }
 0x1d9   :  { %v293_v43 = vpop.permute.xlu0 %292 }
 0x1da   :  { %v295_v44 = vmul.f32 %v293_v43, %v284_v42 }
 0x1dc   :  { %297 = vrot.lane.b32.xlu1 %v295_v44, %s1856_s23 }
 0x1ea   :  { %v320_v52 = vpop.permute.xlu0 %319 }
 0x24e   :  { %v298_v47 = vpop.permute.xlu1 %297 }
 0x24f   :  { %v300_v48 = vadd.f32 %v298_v47, %v290_v46  ;;  %v161_v46 = vadd.f32 %v1588_v14, %v2009_v33 }
 0x251   :  { %1790 = vtanh.f32 %v300_v48  ;;  %v402_v2 = vmul.f32 %v320_v52, %v300_v48 }
 0x25b   :  { %v1791_v49 = vpop.eup %1790 }
 0x25c   :  { %303 = vrot.lane.b32.xlu1 %v1791_v49, %s1857_s28 }
 0x2ce   :  { %v304_v50 = vpop.permute.xlu1 %303 }
 0x2cf   :  { %v2018_v51 = vmul.f32 %v304_v50, %v284_v42  ;;  %v1482_v50 = vld [vmem:[%s2231_s1 + $0x20] sm:$0xff] }
 0x2d1   :  { %v322_v53 = vmul.f32 %v320_v52, %v2018_v51 }
 0x2d3   :  { %324 = vrot.lane.b32.xlu0 %v322_v53, %s1856_s23  ;;  %v656_v53 = vsub.f32 1.0, %v1482_v50 }
 0x345   :  { %v325_v54 = vpop.permute.xlu0 %324 }
 0x346   :  { %1615 = vmatmul.mubr.msk.f32.vlgmr.msra.gmra.mrb[6].mxu1 %vm35_vm1, %v325_v54 }
 0x347   :  { %1743 = vmatpush3.bf16.msra.mxu1 %v1930_v10  ;;  %1636 = vmatprep.mubr.msk.f32.mxu1 %vm1854_vm2, %v1855_v21 }
 0x348   :  { %1744 = vmatprep.subr.bf16.mxu1 %v1853_v16 }
 0x34b   :  { %1746 = vmatpush3.bf16.msra.mxu1 %v1966_v19 }
 0x34c   :  { %1753 = vmatprep.subr.bf16.mxu1 %v1853_v16 }
 0x419   :  { %v394_v56 = vpop.f32.mrb[6].mxu1 }
 0x41a   :  { %v398_v57 = vadd.f32 %v394_v56, %v151_v55  ;;  %v1616_v58 = vpop.f32.mrb[7].mxu1 }
 0x41c   :  { %1792 = vtanh.f32 %v398_v57 }
 0x426   :  { %v1793_v60 = vpop.eup %1792 }
 0x427   :  { %405 = vrot.lane.b32.xlu1 %v1793_v60, %s1857_s28  ;;  %v400_v62 = vmul.f32 0.5, %v1793_v60 }
 0x429   :  { %v401_v63 = vadd.f32 0.5, %v400_v62 }
 0x42b   :  { %433 = vperm.xlu1 %1781, %v428_v61   ;;  %v403_v3 = vmul.f32 %v402_v2, %v401_v63 }
 0x499   :  { %v406_v0 = vpop.permute.xlu1 %405 }
 0x49a   :  { %v408_v1 = vmul.f32 %v406_v0, %v401_v63 }
 0x49c   :  { %410 = vrot.lane.b32.xlu0 %v408_v1, %s1856_s23 }
 0x4aa   :  { %v434_v12 = vpop.permute.xlu1 %433 }
 0x50e   :  { %v411_v4 = vpop.permute.xlu0 %410 }
 0x50f   :  { %v413_v5 = vadd.f32 %v411_v4, %v403_v3  ;;  %v166_v4 = vadd.f32 %v2009_v33, %v2000_v28 }
 0x511   :  { %1794 = vtanh.f32 %v413_v5  ;;  %v516_v36 = vmul.f32 %v434_v12, %v413_v5 }
 0x51b   :  { %v1795_v8 = vpop.eup %1794 }
 0x51c   :  { %416 = vrot.lane.b32.xlu0 %v1795_v8, %s1857_s28  ;;  %v1484_v8 = vld [vmem:[%s2231_s1 + $0x28] sm:$0xff] }
 0x58e   :  { %v417_v9 = vpop.permute.xlu0 %416 }
 0x58f   :  { %v2046_v11 = vmul.f32 %v417_v9, %v401_v63 }
 0x591   :  { %v436_v13 = vmul.f32 %v434_v12, %v2046_v11  ;;  %v770_v12 = vsub.f32 1.0, %v1484_v8 }
 0x593   :  { %438 = vrot.lane.b32.xlu1 %v436_v13, %s1856_s23 }
 0x605   :  { %v439_v17 = vpop.permute.xlu1 %438 }
 0x606   :  { %1626 = vmatmul.mubr.msk.f32.vlgmr.msra.gmra.mrb[4].mxu0 %vm35_vm1, %v439_v17 }
 0x607   :  { %1749 = vmatpush3.bf16.msra.mxu0 %v1930_v10  ;;  %1647 = vmatprep.mubr.msk.f32.mxu0 %vm1854_vm2, %v1855_v21 }
 0x608   :  { %1750 = vmatprep.subr.bf16.mxu0 %v1853_v16 }
 0x60b   :  { %1752 = vmatpush3.bf16.msra.mxu0 %v1966_v19 }
 0x60c   :  { %1759 = vmatprep.subr.bf16.mxu0 %v1853_v16 }
 0x6d9   :  { %v508_v20 = vpop.f32.mrb[4].mxu0 }
 0x6da   :  { %v512_v22 = vadd.f32 %v508_v20, %v156_v18  ;;  %v1627_v23 = vpop.f32.mrb[5].mxu0 }
 0x6dc   :  { %1796 = vtanh.f32 %v512_v22 }
 0x6e6   :  { %v1797_v25 = vpop.eup %1796 }
 0x6e7   :  { %519 = vrot.lane.b32.xlu0 %v1797_v25, %s1857_s28  ;;  %v514_v29 = vmul.f32 0.5, %v1797_v25 }
 0x6e9   :  { %v515_v30 = vadd.f32 0.5, %v514_v29 }
 0x6eb   :  { %547 = vperm.xlu0 %1780, %v542_v26   ;;  %v517_v37 = vmul.f32 %v516_v36, %v515_v30 }
 0x759   :  { %v520_v34 = vpop.permute.xlu0 %519 }
 0x75a   :  { %v522_v35 = vmul.f32 %v520_v34, %v515_v30  ;;  %v171_v34 = vadd.f32 %v1998_v27, %v2009_v33 }
 0x75c   :  { %524 = vrot.lane.b32.xlu1 %v522_v35, %s1856_s23 }
 0x76a   :  { %v548_v43 = vpop.permute.xlu0 %547 }
 0x7ce   :  { %v525_v38 = vpop.permute.xlu1 %524 }
 0x7cf   :  { %v527_v39 = vadd.f32 %v525_v38, %v517_v37  ;;  %v1486_v38 = vld [vmem:[%s2231_s1 + $0x30] sm:$0xff] }
 0x7d1   :  { %1798 = vtanh.f32 %v527_v39  ;;  %v630_v58 = vmul.f32 %v548_v43, %v527_v39 }
 0x7db   :  { %v1799_v40 = vpop.eup %1798 }
 0x7dc   :  { %530 = vrot.lane.b32.xlu1 %v1799_v40, %s1857_s28 }
 0x84e   :  { %v531_v41 = vpop.permute.xlu1 %530 }
 0x84f   :  { %v2064_v42 = vmul.f32 %v531_v41, %v515_v30 }
 0x851   :  { %v550_v44 = vmul.f32 %v548_v43, %v2064_v42 }
 0x853   :  { %552 = vrot.lane.b32.xlu0 %v550_v44, %s1856_s23 }
 0x8c5   :  { %v553_v45 = vpop.permute.xlu0 %552 }
 0x8c6   :  { %1637 = vmatmul.mubr.msk.f32.vlgmr.msra.gmra.mrb[8].mxu1 %vm35_vm1, %v553_v45 }
 0x8c7   :  { %1755 = vmatpush3.bf16.msra.mxu1 %v1930_v10  ;;  %1658 = vmatprep.mubr.msk.f32.mxu1 %vm1854_vm2, %v1855_v21 }
 0x8c8   :  { %1756 = vmatprep.subr.bf16.mxu1 %v1853_v16 }
 0x8cb   :  { %1758 = vmatpush3.bf16.msra.mxu1 %v1966_v19 }
 0x8cc   :  { %1765 = vmatprep.subr.bf16.mxu1 %v1853_v16 }
 0x999   :  { %v622_v47 = vpop.f32.mrb[8].mxu1 }
 0x99a   :  { %v626_v48 = vadd.f32 %v622_v47, %v161_v46  ;;  %v1638_v49 = vpop.f32.mrb[9].mxu1 }
 0x99c   :  { %1800 = vtanh.f32 %v626_v48 }
 0x9a6   :  { %v1801_v52 = vpop.eup %1800 }
 0x9a7   :  { %633 = vrot.lane.b32.xlu1 %v1801_v52, %s1857_s28  ;;  %v628_v54 = vmul.f32 0.5, %v1801_v52  ;;  %v176_v52 = vadd.f32 %v2009_v33, %v2004_v32 }
 0x9a9   :  { %v629_v55 = vadd.f32 0.5, %v628_v54 }
 0x9ab   :  { %661 = vperm.xlu1 %1781, %v656_v53   ;;  %v631_v59 = vmul.f32 %v630_v58, %v629_v55 }
 0xa19   :  { %v634_v56 = vpop.permute.xlu1 %633 }
 0xa1a   :  { %v636_v57 = vmul.f32 %v634_v56, %v629_v55  ;;  %v1488_v56 = vld [vmem:[%s2231_s1 + $0x38] sm:$0xff]  ;;  %s1858_s1 = smov 96  }
 0xa1b   :  { %v998_v58 = vsub.f32 1.0, %v1488_v56 }
 0xa1c   :  { %638 = vrot.lane.b32.xlu0 %v636_v57, %s1856_s23 }
 0xa2a   :  { %v662_v1 = vpop.permute.xlu1 %661 }
 0xa8e   :  { %v639_v60 = vpop.permute.xlu0 %638 }
 0xa8f   :  { %v641_v61 = vadd.f32 %v639_v60, %v631_v59 }
 0xa91   :  { %1802 = vtanh.f32 %v641_v61  ;;  %v744_v28 = vmul.f32 %v662_v1, %v641_v61 }
 0xa9b   :  { %v1803_v62 = vpop.eup %1802 }
 0xa9c   :  { %644 = vrot.lane.b32.xlu0 %v1803_v62, %s1857_s28 }
 0xb0e   :  { %v645_v63 = vpop.permute.xlu0 %644 }
 0xb0f   :  { %v2082_v0 = vmul.f32 %v645_v63, %v629_v55 }
 0xb11   :  { %v664_v2 = vmul.f32 %v662_v1, %v2082_v0 }
 0xb13   :  { %666 = vrot.lane.b32.xlu1 %v664_v2, %s1856_s23 }
 0xb85   :  { %v667_v3 = vpop.permute.xlu1 %666 }
 0xb86   :  { %1648 = vmatmul.mubr.msk.f32.vlgmr.msra.gmra.mrb[6].mxu0 %vm35_vm1, %v667_v3 }
 0xb87   :  { %1761 = vmatpush3.bf16.msra.mxu0 %v1930_v10  ;;  %1669 = vmatprep.mubr.msk.f32.mxu0 %vm1854_vm2, %v1855_v21 }
 0xb88   :  { %1762 = vmatprep.subr.bf16.mxu0 %v1853_v16 }
 0xb8b   :  { %1764 = vmatpush3.bf16.msra.mxu0 %v1966_v19 }
 0xc59   :  { %v736_v5 = vpop.f32.mrb[6].mxu0 }
 0xc5a   :  { %v740_v6 = vadd.f32 %v736_v5, %v166_v4  ;;  %v1649_v7 = vpop.f32.mrb[7].mxu0 }
 0xc5c   :  { %1804 = vtanh.f32 %v740_v6 }
 0xc66   :  { %v1805_v9 = vpop.eup %1804 }
 0xc67   :  { %747 = vrot.lane.b32.xlu0 %v1805_v9, %s1857_s28  ;;  %v742_v13 = vmul.f32 0.5, %v1805_v9  ;;  %v181_v9 = vadd.f32 %v2002_v31, %v2009_v33 }
 0xc69   :  { %v743_v14 = vadd.f32 0.5, %v742_v13 }
 0xc6b   :  { %775 = vperm.xlu0 %1780, %v770_v12   ;;  %v745_v18 = vmul.f32 %v744_v28, %v743_v14 }
 0xcd9   :  { %v748_v15 = vpop.permute.xlu0 %747 }
 0xcda   :  { %v750_v17 = vmul.f32 %v748_v15, %v743_v14 }
 0xcdc   :  { %752 = vrot.lane.b32.xlu1 %v750_v17, %s1856_s23 }
 0xcea   :  { %v776_v26 = vpop.permute.xlu0 %775 }
 0xd4e   :  { %v753_v20 = vpop.permute.xlu1 %752 }
 0xd4f   :  { %v755_v22 = vadd.f32 %v753_v20, %v745_v18 }
 0xd51   :  { %1806 = vtanh.f32 %v755_v22  ;;  %v858_v27 = vmul.f32 %v776_v26, %v755_v22 }
 0xd5b   :  { %v1807_v23 = vpop.eup %1806 }
 0xd5c   :  { %758 = vrot.lane.b32.xlu1 %v1807_v23, %s1857_s28 }
 0xdce   :  { %v759_v24 = vpop.permute.xlu1 %758 }
 0xdcf   :  { %v2100_v25 = vmul.f32 %v759_v24, %v743_v14 }
 0xdd1   :  { %v778_v29 = vmul.f32 %v776_v26, %v2100_v25 }
 0xdd3   :  { %780 = vrot.lane.b32.xlu0 %v778_v29, %s1856_s23  ;;  %v1783_v29 = vld [vmem:[%s2239_s5 + $0x8] sm:$0xff]  }
 0xe45   :  { %v781_v30 = vpop.permute.xlu0 %780 }
 0xe46   :  { %1659 = vmatmul.mubr.msk.f32.vlgmr.msra.gmra.mrb[10].mxu1 %vm35_vm1, %v781_v30 }
 0xe47   :  { %1767 = vmatpush3.bf16.msra.mxu1 %v1930_v10  ;;  %1680 = vmatprep.mubr.msk.f32.mxu1 %vm1854_vm2, %v1855_v21  ;;  %v884_v10 = vsub.f32 1.0, %v1486_v38 }
 0xe48   :  { %1768 = vmatprep.subr.bf16.mxu1 %v1853_v16 }
 0xe4b   :  { %1770 = vmatpush3.bf16.msra.mxu1 %v1966_v19 }
 0xf19   :  { %v850_v35 = vpop.f32.mrb[10].mxu1 }
 0xf1a   :  { %v854_v36 = vadd.f32 %v850_v35, %v171_v34  ;;  %v1660_v37 = vpop.f32.mrb[11].mxu1 }
 0xf1c   :  { %1808 = vtanh.f32 %v854_v36 }
 0xf26   :  { %v1809_v39 = vpop.eup %1808 }
 0xf27   :  { %861 = vrot.lane.b32.xlu1 %v1809_v39, %s1857_s28  ;;  %v856_v21 = vmul.f32 0.5, %v1809_v39 }
 0xf29   :  { %v857_v16 = vadd.f32 0.5, %v856_v21 }
 0xf2b   :  { %889 = vperm.xlu1 %1781, %v884_v10   ;;  %v859_v41 = vmul.f32 %v858_v27, %v857_v16 }
 0xf99   :  { %v862_v40 = vpop.permute.xlu1 %861 }
 0xf9a   :  { %v864_v19 = vmul.f32 %v862_v40, %v857_v16 }
 0xf9c   :  { %866 = vrot.lane.b32.xlu0 %v864_v19, %s1856_s23 }
 0xfaa   :  { %v890_v48 = vpop.permute.xlu1 %889 }
0x100e   :  { %v867_v43 = vpop.permute.xlu0 %866 }
0x100f   :  { %v869_v44 = vadd.f32 %v867_v43, %v859_v41  ;;  %v1784_v43 = vld [vmem:[%s2239_s5 + $0x10] sm:$0xff]  }
0x1010   :  { %1695 = vmatprep.subr.bf16.mxu1 %v1784_v43 }
0x1011   :  { %1810 = vtanh.f32 %v869_v44  ;;  %v972_v32 = vmul.f32 %v890_v48, %v869_v44  ;;  %v1785_v44 = vld [vmem:[%s2239_s5 + $0x18] sm:$0xff]  }
0x101b   :  { %v1811_v45 = vpop.eup %1810 }
0x101c   :  { %872 = vrot.lane.b32.xlu0 %v1811_v45, %s1857_s28 }
0x108e   :  { %v873_v46 = vpop.permute.xlu0 %872 }
0x108f   :  { %v2118_v47 = vmul.f32 %v873_v46, %v857_v16 }
0x1091   :  { %v892_v49 = vmul.f32 %v890_v48, %v2118_v47 }
0x1093   :  { %894 = vrot.lane.b32.xlu1 %v892_v49, %s1856_s23  ;;  %v1490_v49 = vld [vmem:[%s2238_s6 + $0x1] ss:$0 sm:$0xff] }
0x1105   :  { %v895_v50 = vpop.permute.xlu1 %894 }
0x1106   :  { %1670 = vmatmul.mubr.msk.f32.vlgmr.msra.gmra.mrb[8].mxu0 %vm35_vm1, %v895_v50 }
0x11d9   :  { %v964_v53 = vpop.f32.mrb[8].mxu0 }
0x11da   :  { %v968_v54 = vadd.f32 %v964_v53, %v176_v52  ;;  %v1671_v55 = vpop.f32.mrb[9].mxu0 }
0x11dc   :  { %1812 = vtanh.f32 %v968_v54 }
0x11e6   :  { %v1813_v57 = vpop.eup %1812 }
0x11e7   :  { %975 = vrot.lane.b32.xlu0 %v1813_v57, %s1857_s28  ;;  %v970_v59 = vmul.f32 0.5, %v1813_v57 }
0x11e9   :  { %v971_v60 = vadd.f32 0.5, %v970_v59 }
0x11eb   :  { %1003 = vperm.xlu0 %1780, %v998_v58   ;;  %v973_v63 = vmul.f32 %v972_v32, %v971_v60 }
0x1259   :  { %v976_v61 = vpop.permute.xlu0 %975 }
0x125a   :  { %v978_v62 = vmul.f32 %v976_v61, %v971_v60 }
0x125c   :  { %980 = vrot.lane.b32.xlu1 %v978_v62, %s1856_s23 }
0x126a   :  { %v1004_v6 = vpop.permute.xlu0 %1003 }
0x12ce   :  { %v981_v1 = vpop.permute.xlu1 %980 }
0x12cf   :  { %v983_v2 = vadd.f32 %v981_v1, %v973_v63 }
0x12d1   :  { %1814 = vtanh.f32 %v983_v2  ;;  %v1086_v31 = vmul.f32 %v1004_v6, %v983_v2 }
0x12db   :  { %v1815_v3 = vpop.eup %1814 }
0x12dc   :  { %986 = vrot.lane.b32.xlu1 %v1815_v3, %s1857_s28 }
0x134e   :  { %v987_v4 = vpop.permute.xlu1 %986 }
0x134f   :  { %v989_v5 = vmul.f32 %v987_v4, %v971_v60 }
0x1351   :  { %v1006_v7 = vmul.f32 %v1004_v6, %v989_v5 }
0x1353   :  { %1008 = vrot.lane.b32.xlu0 %v1006_v7, %s1856_s23 }
0x13c5   :  { %v1009_v8 = vpop.permute.xlu0 %1008 }
0x13c6   :  { %1681 = vmatmul.mubr.msk.f32.vlgmr.msra.gmra.mrb[12].mxu1 %vm35_vm1, %v1009_v8 }
0x13c7   :  { %1696 = vmatpush3.bf16.msra.mxu1 %v1784_v43 }
0x13c8   :  { %1697 = vmatprep.subr.bf16.mxu1 %v1785_v44 }
0x13cb   :  { %1698 = vmatpush3.bf16.msra.mxu1 %v1785_v44 }
0x1499   :  { %v1078_v12 = vpop.f32.mrb[12].mxu1 }
0x149a   :  { %v1082_v13 = vadd.f32 %v1078_v12, %v181_v9  ;;  %v1682_v14 = vpop.f32.mrb[13].mxu1  ;;  %v1786_v9 = vld [vmem:[%s2239_s5 + $0x20] sm:$0xff]   ;;  %v1787_v12 = vld [vmem:[%s2239_s5 + $0x28] sm:$0xff]  }
0x149c   :  { %1816 = vtanh.f32 %v1082_v13 }
0x14a6   :  { %v1817_v15 = vpop.eup %1816 }
0x14a7   :  { %1089 = vrot.lane.b32.xlu1 %v1817_v15, %s1857_s28  ;;  %v1084_v17 = vmul.f32 0.5, %v1817_v15 }
0x14a9   :  { %v1085_v28 = vadd.f32 0.5, %v1084_v17 }
0x14ab   :  { %v1087_v33 = vmul.f32 %v1086_v31, %v1085_v28 }
0x1519   :  { %v1090_v18 = vpop.permute.xlu1 %1089 }
0x151a   :  { %v1092_v20 = vmul.f32 %v1090_v18, %v1085_v28 }
0x151c   :  { %1094 = vrot.lane.b32.xlu0 %v1092_v20, %s1856_s23  ;;  %v1497_v20 = vld [vmem:[%s2238_s6 + $0x2] ss:$0 sm:$0xff] }
0x1520   :  { %308 = vrot.lane.b32.xlu0 %v2018_v51, %s1856_s23  ;;  %v1782_v51 = vld [vmem:[%s2239_s5] sm:$0xff]  }
0x1521   :  { %1683 = vmatprep.subr.bf16.mxu0 %v1782_v51 }
0x1522   :  { %1684 = vmatpush3.bf16.msra.mxu0 %v1782_v51 }
0x1523   :  { %1685 = vmatprep.subr.bf16.mxu0 %v1783_v29 }
0x1524   :  { %535 = vrot.lane.b32.xlu0 %v2064_v42, %s1856_s23 }
0x1526   :  { %1686 = vmatpush3.bf16.msra.mxu0 %v1783_v29 }
0x1527   :  { %1707 = vmatprep.subr.bf16.mxu0 %v1786_v9 }
0x1528   :  { %763 = vrot.lane.b32.xlu0 %v2100_v25, %s1856_s23 }
0x152c   :  { %991 = vrot.lane.b32.xlu0 %v989_v5, %s1856_s23 }
0x158e   :  { %v1095_v22 = vpop.permute.xlu0 %1094 }
0x158f   :  { %v1097_v23 = vadd.f32 %v1095_v22, %v1087_v33 }
0x1591   :  { %1818 = vtanh.f32 %v1097_v23  ;;  %1112 = vrot.lane.b32.xlu0 %v1097_v23, %s1858_s1 }
0x1592   :  { %v309_v24 = vpop.permute.xlu0 %308 }
0x1593   :  { %311 = vst.msk [vmem:[#allocation3] sm:$0xff] %vm35_vm1, %v309_v24 }
0x1596   :  { %v536_v26 = vpop.permute.xlu0 %535 }
0x1597   :  { %539 = vst.msk [vmem:[#allocation3 + $0x10] sm:$0xff] %vm35_vm1, %v536_v26 }
0x159a   :  { %v764_v42 = vpop.permute.xlu0 %763  ;;  %v1116_v38 = vld [vmem:[#allocation3] sm:$0xff] }
0x159b   :  { %v1819_v25 = vpop.eup %1818  ;;  %767 = vst.msk [vmem:[#allocation3 + $0x20] sm:$0xff] %vm35_vm1, %v764_v42 }
0x159c   :  { %1100 = vrot.lane.b32.xlu1 %v1819_v25, %s1857_s28 }
0x159e   :  { %v992_v30 = vpop.permute.xlu0 %991  ;;  %v1118_v21 = vld [vmem:[#allocation3 + $0x10] sm:$0xff] }
0x159f   :  { %995 = vst.msk [vmem:[#allocation3 + $0x30] sm:$0xff] %vm35_vm1, %v992_v30 }
0x15a0   :  { %421 = vrot.lane.b32.xlu1 %v2046_v11, %s1856_s23 }
0x15a2   :  { %v1120_v19 = vld [vmem:[#allocation3 + $0x20] sm:$0xff] }
0x15a4   :  { %649 = vrot.lane.b32.xlu1 %v2082_v0, %s1856_s23 }
0x15a6   :  { %v1122_v46 = vld [vmem:[#allocation3 + $0x30] sm:$0xff] }
0x15a8   :  { %877 = vrot.lane.b32.xlu1 %v2118_v47, %s1856_s23 }
0x1603   :  { %v1113_v34 = vpop.permute.xlu0 %1112 }
0x1604   :  { %1115 = vst.msk [vmem:[%s2237_s9] sm:$0xff] %vm35_vm1, %v1113_v34 }
0x160e   :  { %v1101_v35 = vpop.permute.xlu1 %1100 }
0x160f   :  { %v1103_v36 = vmul.f32 %v1101_v35, %v1085_v28 }
0x1611   :  { %1105 = vrot.lane.b32.xlu1 %v1103_v36, %s1856_s23 }
0x1612   :  { %v422_v37 = vpop.permute.xlu1 %421 }
0x1613   :  { %425 = vst.msk [vmem:[#allocation3 + $0x8] sm:$0xff] %vm35_vm1, %v422_v37 }
0x1616   :  { %v650_v11 = vpop.permute.xlu1 %649 }
0x1617   :  { %653 = vst.msk [vmem:[#allocation3 + $0x18] sm:$0xff] %vm35_vm1, %v650_v11 }
0x161a   :  { %v878_v0 = vpop.permute.xlu1 %877  ;;  %v1117_v39 = vld [vmem:[#allocation3 + $0x8] sm:$0xff] }
0x161b   :  { %881 = vst.msk [vmem:[#allocation3 + $0x28] sm:$0xff] %vm35_vm1, %v878_v0  ;;  %v1124_v10 = vpack.c.bf16 %v1117_v39, %v1116_v38 }
0x161d   :  { %1687 = vmatprep.mubr.msk.bf16.mxu0 %vm35_vm1, %v1124_v10 }
0x161e   :  { %v1119_v16 = vld [vmem:[#allocation3 + $0x18] sm:$0xff] }
0x161f   :  { %v1125_v40 = vpack.c.bf16 %v1119_v16, %v1118_v21 }
0x1621   :  { %1688 = vmatmul.mubr.msk.bf16.vlgmr.msra.gmra.mrb[12].mxu0 %vm35_vm1, %v1125_v40 }
0x1622   :  { %v1121_v27 = vld [vmem:[#allocation3 + $0x28] sm:$0xff]  ;;  %1708 = vmatpush3.bf16.msra.mxu0 %v1786_v9 }
0x1623   :  { %v1126_v41 = vpack.c.bf16 %v1121_v27, %v1120_v19  ;;  %1709 = vmatprep.subr.bf16.mxu0 %v1787_v12 }
0x1625   :  { %1691 = vmatprep.mubr.msk.bf16.mxu0 %vm35_vm1, %v1126_v41 }
0x1626   :  { %1710 = vmatpush3.bf16.msra.mxu0 %v1787_v12 }
0x1683   :  { %v1106_v45 = vpop.permute.xlu1 %1105 }
0x1684   :  { %1109 = vst.msk [vmem:[#allocation3 + $0x38] sm:$0xff] %vm35_vm1, %v1106_v45  ;;  %1110 = vst.msk [vmem:[%s2236_s8] sm:$0xff] %vm35_vm1, %v1106_v45  ;;  %v1504_v45 = vld [vmem:[%s2238_s6 + $0x3] ss:$0 sm:$0xff] }
0x168b   :  { %v1123_v47 = vld [vmem:[#allocation3 + $0x38] sm:$0xff] }
0x168c   :  { %v1127_v48 = vpack.c.bf16 %v1123_v47, %v1122_v46 }
0x168e   :  { %1692 = vmatmul.mubr.msk.bf16.gmra.mrb[16].mxu0 %vm35_vm1, %v1127_v48 }
0x16f4   :  { %v1689_v50 = vpop.f32.mrb[12].mxu0 }
0x16f5   :  { %v1204_v52 = vadd.f32 %v1689_v50, %v1490_v49  ;;  %v1195_v53 = vpop.f32.mrb[13].mxu0 }
0x16f6   :  { %v1196_v54 = vadd.f32 %v1490_v49, %v1195_v53  ;;  %v1690_v55 = vpop.f32.mrb[14].mxu0 }
0x16f7   :  { %1820 = vtanh.f32 %v1204_v52  ;;  %v1207_v56 = vadd.f32 %v1690_v55, %v1490_v49  ;;  %v1198_v57 = vpop.f32.mrb[15].mxu0 }
0x16f8   :  { %1822 = vtanh.f32 %v1196_v54  ;;  %v1199_v58 = vadd.f32 %v1490_v49, %v1198_v57 }
0x16f9   :  { %1824 = vtanh.f32 %v1207_v56 }
0x16fa   :  { %1826 = vtanh.f32 %v1199_v58 }
0x1701   :  { %v1821_v59 = vpop.eup %1820 }
0x1702   :  { %v1823_v60 = vpop.eup %1822 }
0x1703   :  { %v1825_v61 = vpop.eup %1824 }
0x1704   :  { %v1827_v62 = vpop.eup %1826  ;;  %v1235_v32 = vpack.c.bf16 %v1825_v61, %v1821_v59 }
0x1705   :  { %v1234_v63 = vpack.c.bf16 %v1827_v62, %v1823_v60 }
0x1707   :  { %1699 = vmatprep.mubr.msk.bf16.mxu1 %vm35_vm1, %v1234_v63 }
0x1708   :  { %1700 = vmatmul.mubr.msk.bf16.vlgmr.msra.gmra.mrb[16].mxu1 %vm35_vm1, %v1235_v32 }
0x1761   :  { %v1693_v1 = vpop.f32.mrb[16].mxu0 }
0x1762   :  { %v1220_v2 = vadd.f32 %v1693_v1, %v1490_v49  ;;  %v1211_v3 = vpop.f32.mrb[17].mxu0 }
0x1763   :  { %v1212_v4 = vadd.f32 %v1490_v49, %v1211_v3  ;;  %v1694_v5 = vpop.f32.mrb[18].mxu0 }
0x1764   :  { %1828 = vtanh.f32 %v1220_v2  ;;  %v1223_v6 = vadd.f32 %v1694_v5, %v1490_v49  ;;  %v1214_v7 = vpop.f32.mrb[19].mxu0 }
0x1765   :  { %1830 = vtanh.f32 %v1212_v4  ;;  %v1215_v8 = vadd.f32 %v1490_v49, %v1214_v7 }
0x1766   :  { %1832 = vtanh.f32 %v1223_v6 }
0x1767   :  { %1834 = vtanh.f32 %v1215_v8 }
0x176e   :  { %v1829_v13 = vpop.eup %1828 }
0x176f   :  { %v1831_v14 = vpop.eup %1830 }
0x1770   :  { %v1833_v15 = vpop.eup %1832 }
0x1771   :  { %v1835_v17 = vpop.eup %1834  ;;  %v1237_v28 = vpack.c.bf16 %v1833_v15, %v1829_v13 }
0x1772   :  { %v1236_v18 = vpack.c.bf16 %v1835_v17, %v1831_v14 }
0x1774   :  { %1703 = vmatprep.mubr.msk.bf16.mxu1 %vm35_vm1, %v1236_v18 }
0x1775   :  { %1704 = vmatmul.mubr.msk.bf16.gmra.mrb[20].mxu1 %vm35_vm1, %v1237_v28 }
0x17db   :  { %v1701_v31 = vpop.f32.mrb[16].mxu1 }
0x17dc   :  { %v1314_v33 = vadd.f32 %v1701_v31, %v1497_v20  ;;  %v1305_v22 = vpop.f32.mrb[17].mxu1 }
0x17dd   :  { %v1306_v23 = vadd.f32 %v1497_v20, %v1305_v22  ;;  %v1702_v24 = vpop.f32.mrb[18].mxu1 }
0x17de   :  { %1836 = vtanh.f32 %v1314_v33  ;;  %v1317_v26 = vadd.f32 %v1702_v24, %v1497_v20  ;;  %v1308_v51 = vpop.f32.mrb[19].mxu1 }
0x17df   :  { %1838 = vtanh.f32 %v1306_v23  ;;  %v1309_v42 = vadd.f32 %v1497_v20, %v1308_v51 }
0x17e0   :  { %1840 = vtanh.f32 %v1317_v26 }
0x17e1   :  { %1842 = vtanh.f32 %v1309_v42 }
0x17e8   :  { %v1837_v25 = vpop.eup %1836 }
0x17e9   :  { %v1839_v29 = vpop.eup %1838 }
0x17ea   :  { %v1841_v30 = vpop.eup %1840 }
0x17eb   :  { %v1843_v34 = vpop.eup %1842  ;;  %v1345_v35 = vpack.c.bf16 %v1841_v30, %v1837_v25 }
0x17ec   :  { %v1344_v36 = vpack.c.bf16 %v1843_v34, %v1839_v29 }
0x17ee   :  { %1711 = vmatprep.mubr.msk.bf16.mxu0 %vm35_vm1, %v1344_v36 }
0x17ef   :  { %1712 = vmatmul.mubr.msk.bf16.vlgmr.msra.gmra.mrb[20].mxu0 %vm35_vm1, %v1345_v35 }
0x1848   :  { %v1705_v37 = vpop.f32.mrb[20].mxu1 }
0x1849   :  { %v1330_v11 = vadd.f32 %v1705_v37, %v1497_v20  ;;  %v1321_v0 = vpop.f32.mrb[21].mxu1 }
0x184a   :  { %v1322_v38 = vadd.f32 %v1497_v20, %v1321_v0  ;;  %v1706_v39 = vpop.f32.mrb[22].mxu1 }
0x184b   :  { %1844 = vtanh.f32 %v1330_v11  ;;  %v1333_v10 = vadd.f32 %v1706_v39, %v1497_v20  ;;  %v1324_v21 = vpop.f32.mrb[23].mxu1 }
0x184c   :  { %1846 = vtanh.f32 %v1322_v38  ;;  %v1325_v16 = vadd.f32 %v1497_v20, %v1324_v21 }
0x184d   :  { %1848 = vtanh.f32 %v1333_v10 }
0x184e   :  { %1850 = vtanh.f32 %v1325_v16 }
0x1855   :  { %v1845_v40 = vpop.eup %1844 }
0x1856   :  { %v1847_v19 = vpop.eup %1846 }
0x1857   :  { %v1849_v27 = vpop.eup %1848 }
0x1858   :  { %v1851_v41 = vpop.eup %1850  ;;  %v1347_v43 = vpack.c.bf16 %v1849_v27, %v1845_v40 }
0x1859   :  { %v1346_v44 = vpack.c.bf16 %v1851_v41, %v1847_v19 }
0x185b   :  { %1715 = vmatprep.mubr.msk.bf16.mxu0 %vm35_vm1, %v1346_v44 }
0x185c   :  { %1716 = vmatmul.mubr.msk.bf16.gmra.mrb[24].mxu0 %vm35_vm1, %v1347_v43 }
0x18c2   :  { %v1713_v46 = vpop.f32.mrb[20].mxu0 }
0x18c3   :  { %v1424_v47 = vadd.f32 %v1713_v46, %v1504_v45  ;;  %v1415_v48 = vpop.f32.mrb[21].mxu0 }
0x18c4   :  { %v1416_v49 = vadd.f32 %v1504_v45, %v1415_v48  ;;  %v1714_v50 = vpop.f32.mrb[22].mxu0 }
0x18c5   :  { %1448 = vst [vmem:[%s2240_s7 + $0x10] sm:$0xff] %v1424_v47  ;;  %v1427_v52 = vadd.f32 %v1714_v50, %v1504_v45  ;;  %v1418_v53 = vpop.f32.mrb[23].mxu0 }
0x18c6   :  { %1446 = vst [vmem:[%s2240_s7] sm:$0xff] %v1416_v49  ;;  %v1419_v54 = vadd.f32 %v1504_v45, %v1418_v53 }
0x18c7   :  { %1449 = vst [vmem:[%s2240_s7 + $0x18] sm:$0xff] %v1427_v52 }
0x18c8   :  { %1447 = vst [vmem:[%s2240_s7 + $0x8] sm:$0xff] %v1419_v54 }
0x192f   :  { %v1717_v55 = vpop.f32.mrb[24].mxu0 }
0x1930   :  { %v1440_v56 = vadd.f32 %v1717_v55, %v1504_v45  ;;  %v1431_v57 = vpop.f32.mrb[25].mxu0 }
0x1931   :  { %v1432_v58 = vadd.f32 %v1504_v45, %v1431_v57  ;;  %v1718_v59 = vpop.f32.mrb[26].mxu0 }
0x1932   :  { %1452 = vst [vmem:[%s2240_s7 + $0x30] sm:$0xff] %v1440_v56  ;;  %v1443_v60 = vadd.f32 %v1718_v59, %v1504_v45  ;;  %v1434_v61 = vpop.f32.mrb[27].mxu0 }
0x1933   :  { %1450 = vst [vmem:[%s2240_s7 + $0x20] sm:$0xff] %v1432_v58  ;;  %v1435_v62 = vadd.f32 %v1504_v45, %v1434_v61 }
0x1934   :  { %1453 = vst [vmem:[%s2240_s7 + $0x38] sm:$0xff] %v1443_v60 }
0x1935   :  { %1451 = vst [vmem:[%s2240_s7 + $0x28] sm:$0xff] %v1435_v62 }

</bundles_post_ra>
